<compile_context>
chip_gen: v7x
topology: tpu7x:2x2x1
jax: 0.10.0
libtpu: 0.0.40
codegen_flags: <defaults>
</compile_context>

<pallas_src>
import functools

import jax
import jax.numpy as jnp
import numpy as np
from jax import lax
from jax.experimental import pallas as pl
from jax.experimental.pallas import tpu as pltpu

_LANE = 128


def _round_up(x, m):
    return pl.cdiv(x, m) * m


def _nms_kernel(boxes_cm_ref, boxes_rm_ref, scores_ref, out_ref, masked_ref, *,
                iou_threshold, score_threshold, max_out):
    """One grid step == one (batch, TC-class tile).

    boxes_cm_ref : (1, 8, Np)   f32  rows [x1, y1, x2, y2, area, 0, 0, 0] (shared by the tile)
    boxes_rm_ref : (1, Np, 128) f32  lane groups 0-4 / 8-12 / 16-20 hold the bf16-exact
                                     hi/mid/lo chunks of [x1, y1, x2, y2, area]
    scores_ref   : (1, TC, Np)  f32  scores for TC classes (-inf padding)
    out_ref      : (1, TC, Mp)  i32  per-class picked box indices in pick order, -1 padded
    masked_ref   : (TC, Np)     f32  VMEM scratch: surviving candidate scores (-inf = dead)
    """
    scores = scores_ref[0]                                      # (TC, Np)
    tc, n = scores.shape
    mp = out_ref.shape[-1]

    neg_inf = jnp.float32(-jnp.inf)
    iou_thr = jnp.float32(iou_threshold)

    # Score filter (strict >) matches `classes_score > score_threshold`; pad lanes stay -inf.
    # The survivor mask lives in VMEM so the pick loop carries no large vreg state.
    masked_ref[...] = jnp.where(scores > jnp.float32(score_threshold), scores, neg_inf)

    sel0 = jnp.full((tc, mp), -1, dtype=jnp.int32)

    def body(i, sel):
        masked = masked_ref[...]                                # (TC, Np)
        mx = jnp.max(masked, axis=-1, keepdims=True)            # (TC, 1)
        valid = mx > neg_inf                                    # (TC, 1) any candidate left?

        # Lowest index among the maxima (stable descending-sort tie-break). `lane` is (1, Np)
        # and regenerated per pick so it is never live across iterations.
        lane = lax.broadcasted_iota(jnp.int32, (1, n), 1)
        best = jnp.min(jnp.where(masked == mx, lane, jnp.int32(n)),
                       axis=-1, keepdims=True)                  # (TC, 1)
        pick = lane == best                                     # (TC, Np) one-hot per row

        # Picked-box coordinate extraction on the MXU: one-hot(pick) @ coords -> (TC, 128).
        # Exact because the picked chunk values are exactly bf16-representable and everything
        # else contributes exact zeros to the f32 accumulator.
        ext = jnp.dot(pick.astype(jnp.float32), boxes_rm_ref[0],
                      preferred_element_type=jnp.float32)       # (TC, 128)

        def coord(c):  # hi + mid + lo chunks reconstruct the exact f32 value
            return ext[:, c:c + 1] + ext[:, 8 + c:9 + c] + ext[:, 16 + c:17 + c]

        bx1, by1, bx2, by2, ba = coord(0), coord(1), coord(2), coord(3), coord(4)

        bt = boxes_cm_ref[0]                                    # (8, Np), re-loaded per pick
        x1, y1 = bt[0:1, :], bt[1:2, :]
        x2, y2 = bt[2:3, :], bt[3:4, :]
        area = bt[4:5, :]                                       # (1, Np)

        w = jnp.maximum(jnp.minimum(x2, bx2) - jnp.maximum(x1, bx1), 0.0)   # (TC, Np)
        h = jnp.maximum(jnp.minimum(y2, by2) - jnp.maximum(y1, by1), 0.0)
        inter = w * h
        union = area + ba - inter
        # Divide-free IoU: inter/union > thr  <=>  inter > thr*union. Assumes well-formed
        # boxes (x2 >= x1, y2 >= y1) so union >= 0; exactly at the threshold this can differ
        # from the reference's division by float rounding.
        suppress = (inter > iou_thr * union) | pick

        # When valid is False the whole `masked` row is already -inf, so the bogus pick of
        # box 0 suppresses nothing new and `sel` is gated by `valid` -- keep both as-is.
        masked_ref[...] = jnp.where(suppress, neg_inf, masked)

        out_lane = lax.broadcasted_iota(jnp.int32, (tc, mp), 1)
        return jnp.where((out_lane == i) & valid, best, sel)

    unroll = int(max_out) if max_out <= 32 else 4
    sel = lax.fori_loop(0, max_out, body, sel0, unroll=unroll)
    out_ref[...] = sel[None]


def _bf16_chunks(x):
    """Split f32 -> (hi, mid, lo): each chunk is exactly bf16-representable, hi+mid+lo == x."""
    def trunc(v):
        bits = lax.bitcast_convert_type(v, jnp.uint32) & jnp.uint32(0xFFFF0000)
        return lax.bitcast_convert_type(bits, jnp.float32)
    hi = trunc(x)
    r = x - hi
    mid = trunc(r)
    lo = r - mid
    return hi, mid, lo


def nms_pallas(boxes, scores, *, iou_threshold, score_threshold, max_output_boxes_per_class):
    """boxes (B, N, 4) f32, scores (B, C, N) f32 -> (B*C*M, 3) int32/int64."""
    boxes = boxes.astype(jnp.float32)
    scores = scores.astype(jnp.float32)
    B, N, _ = boxes.shape
    C = scores.shape[1]
    M = int(max_output_boxes_per_class)

    Np = _round_up(N, _LANE)
    Mp = _round_up(max(M, 1), _LANE)

    # Adaptive class tile: as large as possible (fewer grid steps, more work per resident boxes
    # tile), capped so a (TC, Np) f32 temporary stays <= ~64 KiB and so the grid keeps >= 2
    # steps (feed both TensorCores on v7x).
    # TODO(synk): for C < 8 one could pack (batch, class) pairs onto sublanes (per-sublane
    # boxes) to avoid idle sublanes; not done here.
    tc_cap = max(8, ((16384 // Np) // 8) * 8)
    TC = max(8, min(32, _round_up(C, 8), tc_cap))
    Cp = _round_up(C, TC)
    if B * (Cp // TC) < 2 and TC > 8:
        TC = max(8, _round_up(TC // 2, 8))
        Cp = _round_up(C, TC)

    x1, y1, x2, y2 = boxes[..., 0], boxes[..., 1], boxes[..., 2], boxes[..., 3]   # (B, N)
    area = (x2 - x1) * (y2 - y1)
    coords5 = jnp.stack([x1, y1, x2, y2, area], axis=1)                           # (B, 5, N)

    # Coordinate-major boxes (rows x1,y1,x2,y2,area), lane-padded with zeros; padded lanes are
    # never picked because their scores pad to -inf.
    boxes_cm = jnp.zeros((B, 8, Np), jnp.float32).at[:, :5, :N].set(coords5)

    # Box-major MXU operand: 3 exactly-bf16 chunks per coordinate in lane groups 0/8/16.
    hi, mid, lo = _bf16_chunks(jnp.transpose(coords5, (0, 2, 1)))                 # (B, N, 5) each
    boxes_rm = jnp.zeros((B, Np, _LANE), jnp.float32)
    boxes_rm = (boxes_rm.at[:, :N, 0:5].set(hi)
                        .at[:, :N, 8:13].set(mid)
                        .at[:, :N, 16:21].set(lo))

    # Scores padded with -inf along both class and box axes so padding is never "alive".
    scores_p = jnp.pad(scores, ((0, 0), (0, Cp - C), (0, Np - N)),
                       constant_values=-jnp.inf)

    kernel = functools.partial(
        _nms_kernel,
        iou_threshold=float(iou_threshold),
        score_threshold=float(score_threshold),
        max_out=M,
    )

    # Explicit VMEM budget (double-buffered inputs/outputs + survivor-mask scratch), clamped
    # below v7x's 64 MiB physical ceiling.
    vmem_bytes = (2 * 8 * Np * 4 + 2 * Np * _LANE * 4 + 2 * TC * Np * 4
                  + 2 * TC * Mp * 4 + TC * Np * 4)
    vmem_limit = int(min(48 * 2 ** 20, max(8 * 2 ** 20, 2 * vmem_bytes)))

    sel = pl.pallas_call(
        kernel,
        out_shape=jax.ShapeDtypeStruct((B, Cp, Mp), jnp.int32),
        grid_spec=pltpu.PrefetchScalarGridSpec(
            num_scalar_prefetch=0,
            grid=(B, Cp // TC),      # class axis innermost: boxes blocks are DMA-reused
            in_specs=[
                pl.BlockSpec((1, 8, Np), lambda b, c: (b, 0, 0)),
                pl.BlockSpec((1, Np, _LANE), lambda b, c: (b, 0, 0)),
                pl.BlockSpec((1, TC, Np), lambda b, c: (b, c, 0)),
            ],
            out_specs=pl.BlockSpec((1, TC, Mp), lambda b, c: (b, c, 0)),
            scratch_shapes=[pltpu.VMEM((TC, Np), jnp.float32)],
        ),
        compiler_params=pltpu.CompilerParams(
            dimension_semantics=("parallel", "parallel"),
            vmem_limit_bytes=vmem_limit),
    )(boxes_cm, boxes_rm, scores_p)

    sel = sel[:, :C, :M]                                           # (B, C, M) int32, -1 = no pick

    # ---- plain-JAX glue: emulate the torch `.nonzero()` + `.put_` contiguous packing ----
    # TODO(synk): variable-length compaction has no fixed-shape Pallas equivalent; done with a
    # cumsum + scatter (int32 end-to-end) outside the kernel.
    K = B * C * M
    valid = (sel >= 0).reshape(K)
    b_idx = jnp.broadcast_to(jnp.arange(B, dtype=jnp.int32)[:, None, None], (B, C, M))
    c_idx = jnp.broadcast_to(jnp.arange(C, dtype=jnp.int32)[None, :, None], (B, C, M))
    rows = jnp.stack([b_idx, c_idx, sel], axis=-1).reshape(K, 3)
    dest = jnp.where(valid, jnp.cumsum(valid.astype(jnp.int32)) - 1, K)   # K -> OOB -> dropped
    out = jnp.zeros((K, 3), dtype=jnp.int32).at[dest].set(rows, mode="drop")
    # TODO(synk): torch returns int64; to avoid a process-wide x64 flag flip we return int64
    # only when the caller already enabled jax_enable_x64, int32 otherwise.
    out_dtype = jnp.int64 if jax.config.jax_enable_x64 else jnp.int32
    return out.astype(out_dtype)


class NonMaxSuppression:
    """JAX/Pallas mirror of the torch module (no learnable parameters)."""

    def __init__(self, iou_threshold, score_threshold, max_output_boxes_per_class):
        self.iou_threshold = iou_threshold
        self.score_threshold = score_threshold
        self.max_output_boxes_per_class = max_output_boxes_per_class

    def __call__(self, boxes, scores):
        return nms_pallas(
            boxes, scores,
            iou_threshold=self.iou_threshold,
            score_threshold=self.score_threshold,
            max_output_boxes_per_class=self.max_output_boxes_per_class,
        )


# ---------------- pure-numpy reference (mirrors the torch module exactly) ----------------
def _nms_reference(boxes, scores, iou_thr, score_thr, M):
    boxes = boxes.astype(np.float32)
    scores = scores.astype(np.float32)
    B, N, _ = boxes.shape
    C = scores.shape[1]
    rows = []
    for b in range(B):
        for c in range(C):
            s = scores[b, c]
            cand = [i for i in range(N) if s[i] > score_thr]
            cand.sort(key=lambda i: -s[i])  # stable: ties keep lower index first
            suppressed = set()
            keep = []
            for i in cand:
                if i in suppressed:
                    continue
                keep.append(i)
                a = boxes[b, i]
                area_i = (a[2] - a[0]) * (a[3] - a[1])
                for j in cand:
                    if j == i or j in suppressed:
                        continue
                    bb = boxes[b, j]
                    w = max(min(bb[2], a[2]) - max(bb[0], a[0]), np.float32(0.0))
                    h = max(min(bb[3], a[3]) - max(bb[1], a[1]), np.float32(0.0))
                    inter = w * h
                    area_j = (bb[2] - bb[0]) * (bb[3] - bb[1])
                    iou = inter / (area_j + area_i - inter)
                    if iou > iou_thr:
                        suppressed.add(j)
            for k in keep[:M]:
                rows.append([b, c, int(k)])
    out = np.zeros((B * C * M, 3), dtype=np.int64)
    if rows:
        r = np.asarray(rows, dtype=np.int64)
        out[: r.shape[0]] = r
    return out


if __name__ == "__main__":
    key = jax.random.PRNGKey(0)
    B, C, N, M = 2, 3, 32, 4
    iou_thr, score_thr = 0.5, 0.25

    k1, k2, k3 = jax.random.split(key, 3)
    xy = jax.random.uniform(k1, (B, N, 2), dtype=jnp.float32) * 10.0
    wh = jax.random.uniform(k2, (B, N, 2), dtype=jnp.float32) * 5.0 + 0.5
    boxes = jnp.concatenate([xy, xy + wh], axis=-1)            # (B, N, 4) x1,y1,x2,y2
    scores = jax.random.uniform(k3, (B, C, N), dtype=jnp.float32)

    module = NonMaxSuppression(iou_thr, score_thr, M)
    out = jax.block_until_ready(module(boxes, scores))

    assert out.shape == (B * C * M, 3), out.shape
    ref = _nms_reference(np.asarray(boxes), np.asarray(scores), iou_thr, score_thr, M)
    assert np.array_equal(np.asarray(out, dtype=np.int64), ref), "Pallas NMS mismatch vs reference"
    print("KERNEL_OK")
</pallas_src>

<mosaic_0001>
module attributes {stable_mosaic.version = 11 : i64} {
  func.func @_nms_kernel(%arg0: i32, %arg1: i32, %arg2: memref<1x8x128xf32, #tpu.memory_space<vmem>>, %arg3: memref<1x128x128xf32, #tpu.memory_space<vmem>>, %arg4: memref<1x8x128xf32, #tpu.memory_space<vmem>>, %arg5: memref<1x8x128xi32, #tpu.memory_space<vmem>>, %arg6: memref<8x128xf32, #tpu.memory_space<vmem>>) attributes {dimension_semantics = [#tpu.dimension_semantics<parallel>, #tpu.dimension_semantics<parallel>], iteration_bounds = array<i64: 2, 1>, scalar_prefetch = 0 : i64, scratch_operands = 1 : i64, tpu.core_type = #tpu.core_type<tc>, window_params = [{transform_indices = @transform_0, window_bounds = array<i64: 1, 8, 128>}, {transform_indices = @transform_1, window_bounds = array<i64: 1, 128, 128>}, {transform_indices = @transform_2, window_bounds = array<i64: 1, 8, 128>}, {transform_indices = @transform_3, window_bounds = array<i64: 1, 8, 128>}]} {
    %c0 = arith.constant 0 : index
    %c0_0 = arith.constant 0 : index
    %c0_1 = arith.constant 0 : index
    %0 = vector.load %arg4[%c0, %c0_0, %c0_1] : memref<1x8x128xf32, #tpu.memory_space<vmem>>, vector<1x8x128xf32>
    %1 = vector.shape_cast %0 : vector<1x8x128xf32> to vector<8x128xf32>
    %cst = arith.constant 2.500000e-01 : f32
    %2 = vector.broadcast %cst : f32 to vector<8x128xf32>
    %3 = arith.cmpf ogt, %1, %2 : vector<8x128xf32>
    %cst_2 = arith.constant 0xFF800000 : f32
    %4 = vector.broadcast %cst_2 : f32 to vector<8x128xf32>
    %5 = arith.select %3, %1, %4 : vector<8x128xi1>, vector<8x128xf32>
    %c0_3 = arith.constant 0 : index
    %c0_4 = arith.constant 0 : index
    %6 = vector.load %arg6[%c0_3, %c0_4] : memref<8x128xf32, #tpu.memory_space<vmem>>, vector<8x128xf32>
    tpu.vector_store %arg6[%c0_3, %c0_4], %5 {strides = array<i32>} : memref<8x128xf32, #tpu.memory_space<vmem>>, vector<8x128xf32>,
    %c-1_i32 = arith.constant -1 : i32
    %7 = vector.broadcast %c-1_i32 : i32 to vector<8x128xi32>
    %cst_5 = arith.constant 0xFF800000 : f32
    %cst_6 = arith.constant 5.000000e-01 : f32
    %c0_i32 = arith.constant 0 : i32
    %c0_7 = arith.constant 0 : index
    %c0_8 = arith.constant 0 : index
    %8 = vector.load %arg6[%c0_7, %c0_8] : memref<8x128xf32, #tpu.memory_space<vmem>>, vector<8x128xf32>
    %cst_9 = arith.constant dense<0xFF800000> : vector<8xf32>
    %9 = vector.multi_reduction <maximumf>, %8, %cst_9 [1] : vector<8x128xf32> to vector<8xf32>
    %10 = vector.shape_cast %9 : vector<8xf32> to vector<8x1xf32>
    %11 = vector.broadcast %cst_5 : f32 to vector<8x1xf32>
    %12 = arith.cmpf ogt, %10, %11 : vector<8x1xf32>
    %13 = tpu.iota {dimensions = array<i32: 1>} : vector<1x128xi32>
    %14 = vector.broadcast %10 : vector<8x1xf32> to vector<8x128xf32>
    %15 = arith.cmpf oeq, %8, %14 : vector<8x128xf32>
    %c128_i32 = arith.constant 128 : i32
    %16 = vector.shape_cast %13 : vector<1x128xi32> to vector<1x128xi32>
    %17 = vector.broadcast %16 : vector<1x128xi32> to vector<8x128xi32>
    %18 = vector.broadcast %c128_i32 : i32 to vector<8x128xi32>
    %19 = arith.select %15, %17, %18 : vector<8x128xi1>, vector<8x128xi32>
    %cst_10 = arith.constant dense<2147483647> : vector<8xi32>
    %20 = vector.multi_reduction <minsi>, %19, %cst_10 [1] : vector<8x128xi32> to vector<8xi32>
    %21 = vector.shape_cast %20 : vector<8xi32> to vector<8x1xi32>
    %22 = vector.broadcast %13 : vector<1x128xi32> to vector<8x128xi32>
    %23 = vector.broadcast %21 : vector<8x1xi32> to vector<8x128xi32>
    %24 = arith.cmpi eq, %22, %23 : vector<8x128xi32>
    %25 = arith.extui %24 : vector<8x128xi1> to vector<8x128xi32>
    %26 = arith.sitofp %25 : vector<8x128xi32> to vector<8x128xf32>
    %c0_11 = arith.constant 0 : index
    %c0_12 = arith.constant 0 : index
    %c0_13 = arith.constant 0 : index
    %27 = vector.load %arg3[%c0_11, %c0_12, %c0_13] : memref<1x128x128xf32, #tpu.memory_space<vmem>>, vector<1x128x128xf32>
    %28 = vector.shape_cast %27 : vector<1x128x128xf32> to vector<128x128xf32>
    %cst_14 = arith.constant dense<0.000000e+00> : vector<8x128xf32>
    %29 = tpu.matmul %26, %28, %cst_14 {dimension_numbers = #tpu.dot_dimension_numbers<[1], [0], [0], [1], [0, 0, 1, 1], [], []>} : vector<8x128xf32>, vector<128x128xf32>, vector<8x128xf32> -> vector<8x128xf32>
    %30 = vector.extract_strided_slice %29 {offsets = [0, 0], sizes = [8, 1], strides = [1, 1]} : vector<8x128xf32> to vector<8x1xf32>
    %31 = vector.extract_strided_slice %29 {offsets = [0, 8], sizes = [8, 1], strides = [1, 1]} : vector<8x128xf32> to vector<8x1xf32>
    %32 = arith.addf %30, %31 : vector<8x1xf32>
    %33 = vector.extract_strided_slice %29 {offsets = [0, 16], sizes = [8, 1], strides = [1, 1]} : vector<8x128xf32> to vector<8x1xf32>
    %34 = arith.addf %32, %33 : vector<8x1xf32>
    %35 = vector.extract_strided_slice %29 {offsets = [0, 1], sizes = [8, 1], strides = [1, 1]} : vector<8x128xf32> to vector<8x1xf32>
    %36 = vector.extract_strided_slice %29 {offsets = [0, 9], sizes = [8, 1], strides = [1, 1]} : vector<8x128xf32> to vector<8x1xf32>
    %37 = arith.addf %35, %36 : vector<8x1xf32>
    %38 = vector.extract_strided_slice %29 {offsets = [0, 17], sizes = [8, 1], strides = [1, 1]} : vector<8x128xf32> to vector<8x1xf32>
    %39 = arith.addf %37, %38 : vector<8x1xf32>
    %40 = vector.extract_strided_slice %29 {offsets = [0, 2], sizes = [8, 1], strides = [1, 1]} : vector<8x128xf32> to vector<8x1xf32>
    %41 = vector.extract_strided_slice %29 {offsets = [0, 10], sizes = [8, 1], strides = [1, 1]} : vector<8x128xf32> to vector<8x1xf32>
    %42 = arith.addf %40, %41 : vector<8x1xf32>
    %43 = vector.extract_strided_slice %29 {offsets = [0, 18], sizes = [8, 1], strides = [1, 1]} : vector<8x128xf32> to vector<8x1xf32>
    %44 = arith.addf %42, %43 : vector<8x1xf32>
    %45 = vector.extract_strided_slice %29 {offsets = [0, 3], sizes = [8, 1], strides = [1, 1]} : vector<8x128xf32> to vector<8x1xf32>
    %46 = vector.extract_strided_slice %29 {offsets = [0, 11], sizes = [8, 1], strides = [1, 1]} : vector<8x128xf32> to vector<8x1xf32>
    %47 = arith.addf %45, %46 : vector<8x1xf32>
    %48 = vector.extract_strided_slice %29 {offsets = [0, 19], sizes = [8, 1], strides = [1, 1]} : vector<8x128xf32> to vector<8x1xf32>
    %49 = arith.addf %47, %48 : vector<8x1xf32>
    %50 = vector.extract_strided_slice %29 {offsets = [0, 4], sizes = [8, 1], strides = [1, 1]} : vector<8x128xf32> to vector<8x1xf32>
    %51 = vector.extract_strided_slice %29 {offsets = [0, 12], sizes = [8, 1], strides = [1, 1]} : vector<8x128xf32> to vector<8x1xf32>
    %52 = arith.addf %50, %51 : vector<8x1xf32>
    %53 = vector.extract_strided_slice %29 {offsets = [0, 20], sizes = [8, 1], strides = [1, 1]} : vector<8x128xf32> to vector<8x1xf32>
    %54 = arith.addf %52, %53 : vector<8x1xf32>
    %c0_15 = arith.constant 0 : index
    %c0_16 = arith.constant 0 : index
    %c0_17 = arith.constant 0 : index
    %55 = vector.load %arg2[%c0_15, %c0_16, %c0_17] : memref<1x8x128xf32, #tpu.memory_space<vmem>>, vector<1x8x128xf32>
    %56 = vector.shape_cast %55 : vector<1x8x128xf32> to vector<8x128xf32>
    %57 = vector.extract_strided_slice %56 {offsets = [0, 0], sizes = [1, 128], strides = [1, 1]} : vector<8x128xf32> to vector<1x128xf32>
    %58 = vector.extract_strided_slice %56 {offsets = [1, 0], sizes = [1, 128], strides = [1, 1]} : vector<8x128xf32> to vector<1x128xf32>
    %59 = vector.extract_strided_slice %56 {offsets = [2, 0], sizes = [1, 128], strides = [1, 1]} : vector<8x128xf32> to vector<1x128xf32>
    %60 = vector.extract_strided_slice %56 {offsets = [3, 0], sizes = [1, 128], strides = [1, 1]} : vector<8x128xf32> to vector<1x128xf32>
    %61 = vector.extract_strided_slice %56 {offsets = [4, 0], sizes = [1, 128], strides = [1, 1]} : vector<8x128xf32> to vector<1x128xf32>
    %62 = vector.broadcast %59 : vector<1x128xf32> to vector<8x128xf32>
    %63 = vector.broadcast %44 : vector<8x1xf32> to vector<8x128xf32>
    %64 = arith.minimumf %62, %63 : vector<8x128xf32>
    %65 = vector.broadcast %57 : vector<1x128xf32> to vector<8x128xf32>
    %66 = vector.broadcast %34 : vector<8x1xf32> to vector<8x128xf32>
    %67 = arith.maximumf %65, %66 : vector<8x128xf32>
    %68 = arith.subf %64, %67 : vector<8x128xf32>
    %cst_18 = arith.constant 0.000000e+00 : f32
    %69 = vector.broadcast %cst_18 : f32 to vector<8x128xf32>
    %70 = arith.maximumf %68, %69 : vector<8x128xf32>
    %71 = vector.broadcast %60 : vector<1x128xf32> to vector<8x128xf32>
    %72 = vector.broadcast %49 : vector<8x1xf32> to vector<8x128xf32>
    %73 = arith.minimumf %71, %72 : vector<8x128xf32>
    %74 = vector.broadcast %58 : vector<1x128xf32> to vector<8x128xf32>
    %75 = vector.broadcast %39 : vector<8x1xf32> to vector<8x128xf32>
    %76 = arith.maximumf %74, %75 : vector<8x128xf32>
    %77 = arith.subf %73, %76 : vector<8x128xf32>
    %cst_19 = arith.constant 0.000000e+00 : f32
    %78 = vector.broadcast %cst_19 : f32 to vector<8x128xf32>
    %79 = arith.maximumf %77, %78 : vector<8x128xf32>
    %80 = arith.mulf %70, %79 : vector<8x128xf32>
    %81 = vector.broadcast %61 : vector<1x128xf32> to vector<8x128xf32>
    %82 = vector.broadcast %54 : vector<8x1xf32> to vector<8x128xf32>
    %83 = arith.addf %81, %82 : vector<8x128xf32>
    %84 = arith.subf %83, %80 : vector<8x128xf32>
    %85 = vector.broadcast %cst_6 : f32 to vector<8x128xf32>
    %86 = arith.mulf %85, %84 : vector<8x128xf32>
    %87 = arith.cmpf ogt, %80, %86 : vector<8x128xf32>
    %88 = arith.ori %87, %24 : vector<8x128xi1>
    %89 = vector.broadcast %cst_5 : f32 to vector<8x128xf32>
    %90 = arith.select %88, %89, %8 : vector<8x128xi1>, vector<8x128xf32>
    %c0_20 = arith.constant 0 : index
    %c0_21 = arith.constant 0 : index
    %91 = vector.load %arg6[%c0_20, %c0_21] : memref<8x128xf32, #tpu.memory_space<vmem>>, vector<8x128xf32>
    tpu.vector_store %arg6[%c0_20, %c0_21], %90 {strides = array<i32>} : memref<8x128xf32, #tpu.memory_space<vmem>>, vector<8x128xf32>,
    %92 = tpu.iota {dimensions = array<i32: 1>} : vector<8x128xi32>
    %93 = vector.broadcast %c0_i32 : i32 to vector<8x128xi32>
    %94 = arith.cmpi eq, %92, %93 : vector<8x128xi32>
    %95 = vector.broadcast %12 : vector<8x1xi1> to vector<8x128xi1>
    %96 = arith.andi %94, %95 : vector<8x128xi1>
    %97 = vector.shape_cast %21 : vector<8x1xi32> to vector<8x1xi32>
    %98 = vector.broadcast %97 : vector<8x1xi32> to vector<8x128xi32>
    %99 = arith.select %96, %98, %7 : vector<8x128xi1>, vector<8x128xi32>
    %c1_i32 = arith.constant 1 : i32
    %c0_22 = arith.constant 0 : index
    %c0_23 = arith.constant 0 : index
    %100 = vector.load %arg6[%c0_22, %c0_23] : memref<8x128xf32, #tpu.memory_space<vmem>>, vector<8x128xf32>
    %cst_24 = arith.constant dense<0xFF800000> : vector<8xf32>
    %101 = vector.multi_reduction <maximumf>, %100, %cst_24 [1] : vector<8x128xf32> to vector<8xf32>
    %102 = vector.shape_cast %101 : vector<8xf32> to vector<8x1xf32>
    %103 = vector.broadcast %cst_5 : f32 to vector<8x1xf32>
    %104 = arith.cmpf ogt, %102, %103 : vector<8x1xf32>
    %105 = tpu.iota {dimensions = array<i32: 1>} : vector<1x128xi32>
    %106 = vector.broadcast %102 : vector<8x1xf32> to vector<8x128xf32>
    %107 = arith.cmpf oeq, %100, %106 : vector<8x128xf32>
    %c128_i32_25 = arith.constant 128 : i32
    %108 = vector.shape_cast %105 : vector<1x128xi32> to vector<1x128xi32>
    %109 = vector.broadcast %108 : vector<1x128xi32> to vector<8x128xi32>
    %110 = vector.broadcast %c128_i32_25 : i32 to vector<8x128xi32>
    %111 = arith.select %107, %109, %110 : vector<8x128xi1>, vector<8x128xi32>
    %cst_26 = arith.constant dense<2147483647> : vector<8xi32>
    %112 = vector.multi_reduction <minsi>, %111, %cst_26 [1] : vector<8x128xi32> to vector<8xi32>
    %113 = vector.shape_cast %112 : vector<8xi32> to vector<8x1xi32>
    %114 = vector.broadcast %105 : vector<1x128xi32> to vector<8x128xi32>
    %115 = vector.broadcast %113 : vector<8x1xi32> to vector<8x128xi32>
    %116 = arith.cmpi eq, %114, %115 : vector<8x128xi32>
    %117 = arith.extui %116 : vector<8x128xi1> to vector<8x128xi32>
    %118 = arith.sitofp %117 : vector<8x128xi32> to vector<8x128xf32>
    %c0_27 = arith.constant 0 : index
    %c0_28 = arith.constant 0 : index
    %c0_29 = arith.constant 0 : index
    %119 = vector.load %arg3[%c0_27, %c0_28, %c0_29] : memref<1x128x128xf32, #tpu.memory_space<vmem>>, vector<1x128x128xf32>
    %120 = vector.shape_cast %119 : vector<1x128x128xf32> to vector<128x128xf32>
    %cst_30 = arith.constant dense<0.000000e+00> : vector<8x128xf32>
    %121 = tpu.matmul %118, %120, %cst_30 {dimension_numbers = #tpu.dot_dimension_numbers<[1], [0], [0], [1], [0, 0, 1, 1], [], []>} : vector<8x128xf32>, vector<128x128xf32>, vector<8x128xf32> -> vector<8x128xf32>
    %122 = vector.extract_strided_slice %121 {offsets = [0, 0], sizes = [8, 1], strides = [1, 1]} : vector<8x128xf32> to vector<8x1xf32>
    %123 = vector.extract_strided_slice %121 {offsets = [0, 8], sizes = [8, 1], strides = [1, 1]} : vector<8x128xf32> to vector<8x1xf32>
    %124 = arith.addf %122, %123 : vector<8x1xf32>
    %125 = vector.extract_strided_slice %121 {offsets = [0, 16], sizes = [8, 1], strides = [1, 1]} : vector<8x128xf32> to vector<8x1xf32>
    %126 = arith.addf %124, %125 : vector<8x1xf32>
    %127 = vector.extract_strided_slice %121 {offsets = [0, 1], sizes = [8, 1], strides = [1, 1]} : vector<8x128xf32> to vector<8x1xf32>
    %128 = vector.extract_strided_slice %121 {offsets = [0, 9], sizes = [8, 1], strides = [1, 1]} : vector<8x128xf32> to vector<8x1xf32>
    %129 = arith.addf %127, %128 : vector<8x1xf32>
    %130 = vector.extract_strided_slice %121 {offsets = [0, 17], sizes = [8, 1], strides = [1, 1]} : vector<8x128xf32> to vector<8x1xf32>
    %131 = arith.addf %129, %130 : vector<8x1xf32>
    %132 = vector.extract_strided_slice %121 {offsets = [0, 2], sizes = [8, 1], strides = [1, 1]} : vector<8x128xf32> to vector<8x1xf32>
    %133 = vector.extract_strided_slice %121 {offsets = [0, 10], sizes = [8, 1], strides = [1, 1]} : vector<8x128xf32> to vector<8x1xf32>
    %134 = arith.addf %132, %133 : vector<8x1xf32>
    %135 = vector.extract_strided_slice %121 {offsets = [0, 18], sizes = [8, 1], strides = [1, 1]} : vector<8x128xf32> to vector<8x1xf32>
    %136 = arith.addf %134, %135 : vector<8x1xf32>
    %137 = vector.extract_strided_slice %121 {offsets = [0, 3], sizes = [8, 1], strides = [1, 1]} : vector<8x128xf32> to vector<8x1xf32>
    %138 = vector.extract_strided_slice %121 {offsets = [0, 11], sizes = [8, 1], strides = [1, 1]} : vector<8x128xf32> to vector<8x1xf32>
    %139 = arith.addf %137, %138 : vector<8x1xf32>
    %140 = vector.extract_strided_slice %121 {offsets = [0, 19], sizes = [8, 1], strides = [1, 1]} : vector<8x128xf32> to vector<8x1xf32>
    %141 = arith.addf %139, %140 : vector<8x1xf32>
    %142 = vector.extract_strided_slice %121 {offsets = [0, 4], sizes = [8, 1], strides = [1, 1]} : vector<8x128xf32> to vector<8x1xf32>
    %143 = vector.extract_strided_slice %121 {offsets = [0, 12], sizes = [8, 1], strides = [1, 1]} : vector<8x128xf32> to vector<8x1xf32>
    %144 = arith.addf %142, %143 : vector<8x1xf32>
    %145 = vector.extract_strided_slice %121 {offsets = [0, 20], sizes = [8, 1], strides = [1, 1]} : vector<8x128xf32> to vector<8x1xf32>
    %146 = arith.addf %144, %145 : vector<8x1xf32>
    %c0_31 = arith.constant 0 : index
    %c0_32 = arith.constant 0 : index
    %c0_33 = arith.constant 0 : index
    %147 = vector.load %arg2[%c0_31, %c0_32, %c0_33] : memref<1x8x128xf32, #tpu.memory_space<vmem>>, vector<1x8x128xf32>
    %148 = vector.shape_cast %147 : vector<1x8x128xf32> to vector<8x128xf32>
    %149 = vector.extract_strided_slice %148 {offsets = [0, 0], sizes = [1, 128], strides = [1, 1]} : vector<8x128xf32> to vector<1x128xf32>
    %150 = vector.extract_strided_slice %148 {offsets = [1, 0], sizes = [1, 128], strides = [1, 1]} : vector<8x128xf32> to vector<1x128xf32>
    %151 = vector.extract_strided_slice %148 {offsets = [2, 0], sizes = [1, 128], strides = [1, 1]} : vector<8x128xf32> to vector<1x128xf32>
    %152 = vector.extract_strided_slice %148 {offsets = [3, 0], sizes = [1, 128], strides = [1, 1]} : vector<8x128xf32> to vector<1x128xf32>
    %153 = vector.extract_strided_slice %148 {offsets = [4, 0], sizes = [1, 128], strides = [1, 1]} : vector<8x128xf32> to vector<1x128xf32>
    %154 = vector.broadcast %151 : vector<1x128xf32> to vector<8x128xf32>
    %155 = vector.broadcast %136 : vector<8x1xf32> to vector<8x128xf32>
    %156 = arith.minimumf %154, %155 : vector<8x128xf32>
    %157 = vector.broadcast %149 : vector<1x128xf32> to vector<8x128xf32>
    %158 = vector.broadcast %126 : vector<8x1xf32> to vector<8x128xf32>
    %159 = arith.maximumf %157, %158 : vector<8x128xf32>
    %160 = arith.subf %156, %159 : vector<8x128xf32>
    %cst_34 = arith.constant 0.000000e+00 : f32
    %161 = vector.broadcast %cst_34 : f32 to vector<8x128xf32>
    %162 = arith.maximumf %160, %161 : vector<8x128xf32>
    %163 = vector.broadcast %152 : vector<1x128xf32> to vector<8x128xf32>
    %164 = vector.broadcast %141 : vector<8x1xf32> to vector<8x128xf32>
    %165 = arith.minimumf %163, %164 : vector<8x128xf32>
    %166 = vector.broadcast %150 : vector<1x128xf32> to vector<8x128xf32>
    %167 = vector.broadcast %131 : vector<8x1xf32> to vector<8x128xf32>
    %168 = arith.maximumf %166, %167 : vector<8x128xf32>
    %169 = arith.subf %165, %168 : vector<8x128xf32>
    %cst_35 = arith.constant 0.000000e+00 : f32
    %170 = vector.broadcast %cst_35 : f32 to vector<8x128xf32>
    %171 = arith.maximumf %169, %170 : vector<8x128xf32>
    %172 = arith.mulf %162, %171 : vector<8x128xf32>
    %173 = vector.broadcast %153 : vector<1x128xf32> to vector<8x128xf32>
    %174 = vector.broadcast %146 : vector<8x1xf32> to vector<8x128xf32>
    %175 = arith.addf %173, %174 : vector<8x128xf32>
    %176 = arith.subf %175, %172 : vector<8x128xf32>
    %177 = vector.broadcast %cst_6 : f32 to vector<8x128xf32>
    %178 = arith.mulf %177, %176 : vector<8x128xf32>
    %179 = arith.cmpf ogt, %172, %178 : vector<8x128xf32>
    %180 = arith.ori %179, %116 : vector<8x128xi1>
    %181 = vector.broadcast %cst_5 : f32 to vector<8x128xf32>
    %182 = arith.select %180, %181, %100 : vector<8x128xi1>, vector<8x128xf32>
    %c0_36 = arith.constant 0 : index
    %c0_37 = arith.constant 0 : index
    %183 = vector.load %arg6[%c0_36, %c0_37] : memref<8x128xf32, #tpu.memory_space<vmem>>, vector<8x128xf32>
    tpu.vector_store %arg6[%c0_36, %c0_37], %182 {strides = array<i32>} : memref<8x128xf32, #tpu.memory_space<vmem>>, vector<8x128xf32>,
    %184 = tpu.iota {dimensions = array<i32: 1>} : vector<8x128xi32>
    %185 = vector.broadcast %c1_i32 : i32 to vector<8x128xi32>
    %186 = arith.cmpi eq, %184, %185 : vector<8x128xi32>
    %187 = vector.broadcast %104 : vector<8x1xi1> to vector<8x128xi1>
    %188 = arith.andi %186, %187 : vector<8x128xi1>
    %189 = vector.shape_cast %113 : vector<8x1xi32> to vector<8x1xi32>
    %190 = vector.broadcast %189 : vector<8x1xi32> to vector<8x128xi32>
    %191 = arith.select %188, %190, %99 : vector<8x128xi1>, vector<8x128xi32>
    %c2_i32 = arith.constant 2 : i32
    %c0_38 = arith.constant 0 : index
    %c0_39 = arith.constant 0 : index
    %192 = vector.load %arg6[%c0_38, %c0_39] : memref<8x128xf32, #tpu.memory_space<vmem>>, vector<8x128xf32>
    %cst_40 = arith.constant dense<0xFF800000> : vector<8xf32>
    %193 = vector.multi_reduction <maximumf>, %192, %cst_40 [1] : vector<8x128xf32> to vector<8xf32>
    %194 = vector.shape_cast %193 : vector<8xf32> to vector<8x1xf32>
    %195 = vector.broadcast %cst_5 : f32 to vector<8x1xf32>
    %196 = arith.cmpf ogt, %194, %195 : vector<8x1xf32>
    %197 = tpu.iota {dimensions = array<i32: 1>} : vector<1x128xi32>
    %198 = vector.broadcast %194 : vector<8x1xf32> to vector<8x128xf32>
    %199 = arith.cmpf oeq, %192, %198 : vector<8x128xf32>
    %c128_i32_41 = arith.constant 128 : i32
    %200 = vector.shape_cast %197 : vector<1x128xi32> to vector<1x128xi32>
    %201 = vector.broadcast %200 : vector<1x128xi32> to vector<8x128xi32>
    %202 = vector.broadcast %c128_i32_41 : i32 to vector<8x128xi32>
    %203 = arith.select %199, %201, %202 : vector<8x128xi1>, vector<8x128xi32>
    %cst_42 = arith.constant dense<2147483647> : vector<8xi32>
    %204 = vector.multi_reduction <minsi>, %203, %cst_42 [1] : vector<8x128xi32> to vector<8xi32>
    %205 = vector.shape_cast %204 : vector<8xi32> to vector<8x1xi32>
    %206 = vector.broadcast %197 : vector<1x128xi32> to vector<8x128xi32>
    %207 = vector.broadcast %205 : vector<8x1xi32> to vector<8x128xi32>
    %208 = arith.cmpi eq, %206, %207 : vector<8x128xi32>
    %209 = arith.extui %208 : vector<8x128xi1> to vector<8x128xi32>
    %210 = arith.sitofp %209 : vector<8x128xi32> to vector<8x128xf32>
    %c0_43 = arith.constant 0 : index
    %c0_44 = arith.constant 0 : index
    %c0_45 = arith.constant 0 : index
    %211 = vector.load %arg3[%c0_43, %c0_44, %c0_45] : memref<1x128x128xf32, #tpu.memory_space<vmem>>, vector<1x128x128xf32>
    %212 = vector.shape_cast %211 : vector<1x128x128xf32> to vector<128x128xf32>
    %cst_46 = arith.constant dense<0.000000e+00> : vector<8x128xf32>
    %213 = tpu.matmul %210, %212, %cst_46 {dimension_numbers = #tpu.dot_dimension_numbers<[1], [0], [0], [1], [0, 0, 1, 1], [], []>} : vector<8x128xf32>, vector<128x128xf32>, vector<8x128xf32> -> vector<8x128xf32>
    %214 = vector.extract_strided_slice %213 {offsets = [0, 0], sizes = [8, 1], strides = [1, 1]} : vector<8x128xf32> to vector<8x1xf32>
    %215 = vector.extract_strided_slice %213 {offsets = [0, 8], sizes = [8, 1], strides = [1, 1]} : vector<8x128xf32> to vector<8x1xf32>
    %216 = arith.addf %214, %215 : vector<8x1xf32>
    %217 = vector.extract_strided_slice %213 {offsets = [0, 16], sizes = [8, 1], strides = [1, 1]} : vector<8x128xf32> to vector<8x1xf32>
    %218 = arith.addf %216, %217 : vector<8x1xf32>
    %219 = vector.extract_strided_slice %213 {offsets = [0, 1], sizes = [8, 1], strides = [1, 1]} : vector<8x128xf32> to vector<8x1xf32>
    %220 = vector.extract_strided_slice %213 {offsets = [0, 9], sizes = [8, 1], strides = [1, 1]} : vector<8x128xf32> to vector<8x1xf32>
    %221 = arith.addf %219, %220 : vector<8x1xf32>
    %222 = vector.extract_strided_slice %213 {offsets = [0, 17], sizes = [8, 1], strides = [1, 1]} : vector<8x128xf32> to vector<8x1xf32>
    %223 = arith.addf %221, %222 : vector<8x1xf32>
    %224 = vector.extract_strided_slice %213 {offsets = [0, 2], sizes = [8, 1], strides = [1, 1]} : vector<8x128xf32> to vector<8x1xf32>
    %225 = vector.extract_strided_slice %213 {offsets = [0, 10], sizes = [8, 1], strides = [1, 1]} : vector<8x128xf32> to vector<8x1xf32>
    %226 = arith.addf %224, %225 : vector<8x1xf32>
    %227 = vector.extract_strided_slice %213 {offsets = [0, 18], sizes = [8, 1], strides = [1, 1]} : vector<8x128xf32> to vector<8x1xf32>
    %228 = arith.addf %226, %227 : vector<8x1xf32>
    %229 = vector.extract_strided_slice %213 {offsets = [0, 3], sizes = [8, 1], strides = [1, 1]} : vector<8x128xf32> to vector<8x1xf32>
    %230 = vector.extract_strided_slice %213 {offsets = [0, 11], sizes = [8, 1], strides = [1, 1]} : vector<8x128xf32> to vector<8x1xf32>
    %231 = arith.addf %229, %230 : vector<8x1xf32>
    %232 = vector.extract_strided_slice %213 {offsets = [0, 19], sizes = [8, 1], strides = [1, 1]} : vector<8x128xf32> to vector<8x1xf32>
    %233 = arith.addf %231, %232 : vector<8x1xf32>
    %234 = vector.extract_strided_slice %213 {offsets = [0, 4], sizes = [8, 1], strides = [1, 1]} : vector<8x128xf32> to vector<8x1xf32>
    %235 = vector.extract_strided_slice %213 {offsets = [0, 12], sizes = [8, 1], strides = [1, 1]} : vector<8x128xf32> to vector<8x1xf32>
    %236 = arith.addf %234, %235 : vector<8x1xf32>
    %237 = vector.extract_strided_slice %213 {offsets = [0, 20], sizes = [8, 1], strides = [1, 1]} : vector<8x128xf32> to vector<8x1xf32>
    %238 = arith.addf %236, %237 : vector<8x1xf32>
    %c0_47 = arith.constant 0 : index
    %c0_48 = arith.constant 0 : index
    %c0_49 = arith.constant 0 : index
    %239 = vector.load %arg2[%c0_47, %c0_48, %c0_49] : memref<1x8x128xf32, #tpu.memory_space<vmem>>, vector<1x8x128xf32>
    %240 = vector.shape_cast %239 : vector<1x8x128xf32> to vector<8x128xf32>
    %241 = vector.extract_strided_slice %240 {offsets = [0, 0], sizes = [1, 128], strides = [1, 1]} : vector<8x128xf32> to vector<1x128xf32>
    %242 = vector.extract_strided_slice %240 {offsets = [1, 0], sizes = [1, 128], strides = [1, 1]} : vector<8x128xf32> to vector<1x128xf32>
    %243 = vector.extract_strided_slice %240 {offsets = [2, 0], sizes = [1, 128], strides = [1, 1]} : vector<8x128xf32> to vector<1x128xf32>
    %244 = vector.extract_strided_slice %240 {offsets = [3, 0], sizes = [1, 128], strides = [1, 1]} : vector<8x128xf32> to vector<1x128xf32>
    %245 = vector.extract_strided_slice %240 {offsets = [4, 0], sizes = [1, 128], strides = [1, 1]} : vector<8x128xf32> to vector<1x128xf32>
    %246 = vector.broadcast %243 : vector<1x128xf32> to vector<8x128xf32>
    %247 = vector.broadcast %228 : vector<8x1xf32> to vector<8x128xf32>
    %248 = arith.minimumf %246, %247 : vector<8x128xf32>
    %249 = vector.broadcast %241 : vector<1x128xf32> to vector<8x128xf32>
    %250 = vector.broadcast %218 : vector<8x1xf32> to vector<8x128xf32>
    %251 = arith.maximumf %249, %250 : vector<8x128xf32>
    %252 = arith.subf %248, %251 : vector<8x128xf32>
    %cst_50 = arith.constant 0.000000e+00 : f32
    %253 = vector.broadcast %cst_50 : f32 to vector<8x128xf32>
    %254 = arith.maximumf %252, %253 : vector<8x128xf32>
    %255 = vector.broadcast %244 : vector<1x128xf32> to vector<8x128xf32>
    %256 = vector.broadcast %233 : vector<8x1xf32> to vector<8x128xf32>
    %257 = arith.minimumf %255, %256 : vector<8x128xf32>
    %258 = vector.broadcast %242 : vector<1x128xf32> to vector<8x128xf32>
    %259 = vector.broadcast %223 : vector<8x1xf32> to vector<8x128xf32>
    %260 = arith.maximumf %258, %259 : vector<8x128xf32>
    %261 = arith.subf %257, %260 : vector<8x128xf32>
    %cst_51 = arith.constant 0.000000e+00 : f32
    %262 = vector.broadcast %cst_51 : f32 to vector<8x128xf32>
    %263 = arith.maximumf %261, %262 : vector<8x128xf32>
    %264 = arith.mulf %254, %263 : vector<8x128xf32>
    %265 = vector.broadcast %245 : vector<1x128xf32> to vector<8x128xf32>
    %266 = vector.broadcast %238 : vector<8x1xf32> to vector<8x128xf32>
    %267 = arith.addf %265, %266 : vector<8x128xf32>
    %268 = arith.subf %267, %264 : vector<8x128xf32>
    %269 = vector.broadcast %cst_6 : f32 to vector<8x128xf32>
    %270 = arith.mulf %269, %268 : vector<8x128xf32>
    %271 = arith.cmpf ogt, %264, %270 : vector<8x128xf32>
    %272 = arith.ori %271, %208 : vector<8x128xi1>
    %273 = vector.broadcast %cst_5 : f32 to vector<8x128xf32>
    %274 = arith.select %272, %273, %192 : vector<8x128xi1>, vector<8x128xf32>
    %c0_52 = arith.constant 0 : index
    %c0_53 = arith.constant 0 : index
    %275 = vector.load %arg6[%c0_52, %c0_53] : memref<8x128xf32, #tpu.memory_space<vmem>>, vector<8x128xf32>
    tpu.vector_store %arg6[%c0_52, %c0_53], %274 {strides = array<i32>} : memref<8x128xf32, #tpu.memory_space<vmem>>, vector<8x128xf32>,
    %276 = tpu.iota {dimensions = array<i32: 1>} : vector<8x128xi32>
    %277 = vector.broadcast %c2_i32 : i32 to vector<8x128xi32>
    %278 = arith.cmpi eq, %276, %277 : vector<8x128xi32>
    %279 = vector.broadcast %196 : vector<8x1xi1> to vector<8x128xi1>
    %280 = arith.andi %278, %279 : vector<8x128xi1>
    %281 = vector.shape_cast %205 : vector<8x1xi32> to vector<8x1xi32>
    %282 = vector.broadcast %281 : vector<8x1xi32> to vector<8x128xi32>
    %283 = arith.select %280, %282, %191 : vector<8x128xi1>, vector<8x128xi32>
    %c3_i32 = arith.constant 3 : i32
    %c0_54 = arith.constant 0 : index
    %c0_55 = arith.constant 0 : index
    %284 = vector.load %arg6[%c0_54, %c0_55] : memref<8x128xf32, #tpu.memory_space<vmem>>, vector<8x128xf32>
    %cst_56 = arith.constant dense<0xFF800000> : vector<8xf32>
    %285 = vector.multi_reduction <maximumf>, %284, %cst_56 [1] : vector<8x128xf32> to vector<8xf32>
    %286 = vector.shape_cast %285 : vector<8xf32> to vector<8x1xf32>
    %287 = vector.broadcast %cst_5 : f32 to vector<8x1xf32>
    %288 = arith.cmpf ogt, %286, %287 : vector<8x1xf32>
    %289 = tpu.iota {dimensions = array<i32: 1>} : vector<1x128xi32>
    %290 = vector.broadcast %286 : vector<8x1xf32> to vector<8x128xf32>
    %291 = arith.cmpf oeq, %284, %290 : vector<8x128xf32>
    %c128_i32_57 = arith.constant 128 : i32
    %292 = vector.shape_cast %289 : vector<1x128xi32> to vector<1x128xi32>
    %293 = vector.broadcast %292 : vector<1x128xi32> to vector<8x128xi32>
    %294 = vector.broadcast %c128_i32_57 : i32 to vector<8x128xi32>
    %295 = arith.select %291, %293, %294 : vector<8x128xi1>, vector<8x128xi32>
    %cst_58 = arith.constant dense<2147483647> : vector<8xi32>
    %296 = vector.multi_reduction <minsi>, %295, %cst_58 [1] : vector<8x128xi32> to vector<8xi32>
    %297 = vector.shape_cast %296 : vector<8xi32> to vector<8x1xi32>
    %298 = vector.broadcast %289 : vector<1x128xi32> to vector<8x128xi32>
    %299 = vector.broadcast %297 : vector<8x1xi32> to vector<8x128xi32>
    %300 = arith.cmpi eq, %298, %299 : vector<8x128xi32>
    %301 = arith.extui %300 : vector<8x128xi1> to vector<8x128xi32>
    %302 = arith.sitofp %301 : vector<8x128xi32> to vector<8x128xf32>
    %c0_59 = arith.constant 0 : index
    %c0_60 = arith.constant 0 : index
    %c0_61 = arith.constant 0 : index
    %303 = vector.load %arg3[%c0_59, %c0_60, %c0_61] : memref<1x128x128xf32, #tpu.memory_space<vmem>>, vector<1x128x128xf32>
    %304 = vector.shape_cast %303 : vector<1x128x128xf32> to vector<128x128xf32>
    %cst_62 = arith.constant dense<0.000000e+00> : vector<8x128xf32>
    %305 = tpu.matmul %302, %304, %cst_62 {dimension_numbers = #tpu.dot_dimension_numbers<[1], [0], [0], [1], [0, 0, 1, 1], [], []>} : vector<8x128xf32>, vector<128x128xf32>, vector<8x128xf32> -> vector<8x128xf32>
    %306 = vector.extract_strided_slice %305 {offsets = [0, 0], sizes = [8, 1], strides = [1, 1]} : vector<8x128xf32> to vector<8x1xf32>
    %307 = vector.extract_strided_slice %305 {offsets = [0, 8], sizes = [8, 1], strides = [1, 1]} : vector<8x128xf32> to vector<8x1xf32>
    %308 = arith.addf %306, %307 : vector<8x1xf32>
    %309 = vector.extract_strided_slice %305 {offsets = [0, 16], sizes = [8, 1], strides = [1, 1]} : vector<8x128xf32> to vector<8x1xf32>
    %310 = arith.addf %308, %309 : vector<8x1xf32>
    %311 = vector.extract_strided_slice %305 {offsets = [0, 1], sizes = [8, 1], strides = [1, 1]} : vector<8x128xf32> to vector<8x1xf32>
    %312 = vector.extract_strided_slice %305 {offsets = [0, 9], sizes = [8, 1], strides = [1, 1]} : vector<8x128xf32> to vector<8x1xf32>
    %313 = arith.addf %311, %312 : vector<8x1xf32>
    %314 = vector.extract_strided_slice %305 {offsets = [0, 17], sizes = [8, 1], strides = [1, 1]} : vector<8x128xf32> to vector<8x1xf32>
    %315 = arith.addf %313, %314 : vector<8x1xf32>
    %316 = vector.extract_strided_slice %305 {offsets = [0, 2], sizes = [8, 1], strides = [1, 1]} : vector<8x128xf32> to vector<8x1xf32>
    %317 = vector.extract_strided_slice %305 {offsets = [0, 10], sizes = [8, 1], strides = [1, 1]} : vector<8x128xf32> to vector<8x1xf32>
    %318 = arith.addf %316, %317 : vector<8x1xf32>
    %319 = vector.extract_strided_slice %305 {offsets = [0, 18], sizes = [8, 1], strides = [1, 1]} : vector<8x128xf32> to vector<8x1xf32>
    %320 = arith.addf %318, %319 : vector<8x1xf32>
    %321 = vector.extract_strided_slice %305 {offsets = [0, 3], sizes = [8, 1], strides = [1, 1]} : vector<8x128xf32> to vector<8x1xf32>
    %322 = vector.extract_strided_slice %305 {offsets = [0, 11], sizes = [8, 1], strides = [1, 1]} : vector<8x128xf32> to vector<8x1xf32>
    %323 = arith.addf %321, %322 : vector<8x1xf32>
    %324 = vector.extract_strided_slice %305 {offsets = [0, 19], sizes = [8, 1], strides = [1, 1]} : vector<8x128xf32> to vector<8x1xf32>
    %325 = arith.addf %323, %324 : vector<8x1xf32>
    %326 = vector.extract_strided_slice %305 {offsets = [0, 4], sizes = [8, 1], strides = [1, 1]} : vector<8x128xf32> to vector<8x1xf32>
    %327 = vector.extract_strided_slice %305 {offsets = [0, 12], sizes = [8, 1], strides = [1, 1]} : vector<8x128xf32> to vector<8x1xf32>
    %328 = arith.addf %326, %327 : vector<8x1xf32>
    %329 = vector.extract_strided_slice %305 {offsets = [0, 20], sizes = [8, 1], strides = [1, 1]} : vector<8x128xf32> to vector<8x1xf32>
    %330 = arith.addf %328, %329 : vector<8x1xf32>
    %c0_63 = arith.constant 0 : index
    %c0_64 = arith.constant 0 : index
    %c0_65 = arith.constant 0 : index
    %331 = vector.load %arg2[%c0_63, %c0_64, %c0_65] : memref<1x8x128xf32, #tpu.memory_space<vmem>>, vector<1x8x128xf32>
    %332 = vector.shape_cast %331 : vector<1x8x128xf32> to vector<8x128xf32>
    %333 = vector.extract_strided_slice %332 {offsets = [0, 0], sizes = [1, 128], strides = [1, 1]} : vector<8x128xf32> to vector<1x128xf32>
    %334 = vector.extract_strided_slice %332 {offsets = [1, 0], sizes = [1, 128], strides = [1, 1]} : vector<8x128xf32> to vector<1x128xf32>
    %335 = vector.extract_strided_slice %332 {offsets = [2, 0], sizes = [1, 128], strides = [1, 1]} : vector<8x128xf32> to vector<1x128xf32>
    %336 = vector.extract_strided_slice %332 {offsets = [3, 0], sizes = [1, 128], strides = [1, 1]} : vector<8x128xf32> to vector<1x128xf32>
    %337 = vector.extract_strided_slice %332 {offsets = [4, 0], sizes = [1, 128], strides = [1, 1]} : vector<8x128xf32> to vector<1x128xf32>
    %338 = vector.broadcast %335 : vector<1x128xf32> to vector<8x128xf32>
    %339 = vector.broadcast %320 : vector<8x1xf32> to vector<8x128xf32>
    %340 = arith.minimumf %338, %339 : vector<8x128xf32>
    %341 = vector.broadcast %333 : vector<1x128xf32> to vector<8x128xf32>
    %342 = vector.broadcast %310 : vector<8x1xf32> to vector<8x128xf32>
    %343 = arith.maximumf %341, %342 : vector<8x128xf32>
    %344 = arith.subf %340, %343 : vector<8x128xf32>
    %cst_66 = arith.constant 0.000000e+00 : f32
    %345 = vector.broadcast %cst_66 : f32 to vector<8x128xf32>
    %346 = arith.maximumf %344, %345 : vector<8x128xf32>
    %347 = vector.broadcast %336 : vector<1x128xf32> to vector<8x128xf32>
    %348 = vector.broadcast %325 : vector<8x1xf32> to vector<8x128xf32>
    %349 = arith.minimumf %347, %348 : vector<8x128xf32>
    %350 = vector.broadcast %334 : vector<1x128xf32> to vector<8x128xf32>
    %351 = vector.broadcast %315 : vector<8x1xf32> to vector<8x128xf32>
    %352 = arith.maximumf %350, %351 : vector<8x128xf32>
    %353 = arith.subf %349, %352 : vector<8x128xf32>
    %cst_67 = arith.constant 0.000000e+00 : f32
    %354 = vector.broadcast %cst_67 : f32 to vector<8x128xf32>
    %355 = arith.maximumf %353, %354 : vector<8x128xf32>
    %356 = arith.mulf %346, %355 : vector<8x128xf32>
    %357 = vector.broadcast %337 : vector<1x128xf32> to vector<8x128xf32>
    %358 = vector.broadcast %330 : vector<8x1xf32> to vector<8x128xf32>
    %359 = arith.addf %357, %358 : vector<8x128xf32>
    %360 = arith.subf %359, %356 : vector<8x128xf32>
    %361 = vector.broadcast %cst_6 : f32 to vector<8x128xf32>
    %362 = arith.mulf %361, %360 : vector<8x128xf32>
    %363 = arith.cmpf ogt, %356, %362 : vector<8x128xf32>
    %364 = arith.ori %363, %300 : vector<8x128xi1>
    %365 = vector.broadcast %cst_5 : f32 to vector<8x128xf32>
    %366 = arith.select %364, %365, %284 : vector<8x128xi1>, vector<8x128xf32>
    %c0_68 = arith.constant 0 : index
    %c0_69 = arith.constant 0 : index
    %367 = vector.load %arg6[%c0_68, %c0_69] : memref<8x128xf32, #tpu.memory_space<vmem>>, vector<8x128xf32>
    tpu.vector_store %arg6[%c0_68, %c0_69], %366 {strides = array<i32>} : memref<8x128xf32, #tpu.memory_space<vmem>>, vector<8x128xf32>,
    %368 = tpu.iota {dimensions = array<i32: 1>} : vector<8x128xi32>
    %369 = vector.broadcast %c3_i32 : i32 to vector<8x128xi32>
    %370 = arith.cmpi eq, %368, %369 : vector<8x128xi32>
    %371 = vector.broadcast %288 : vector<8x1xi1> to vector<8x128xi1>
    %372 = arith.andi %370, %371 : vector<8x128xi1>
    %373 = vector.shape_cast %297 : vector<8x1xi32> to vector<8x1xi32>
    %374 = vector.broadcast %373 : vector<8x1xi32> to vector<8x128xi32>
    %375 = arith.select %372, %374, %283 : vector<8x128xi1>, vector<8x128xi32>
    %c4_i32 = arith.constant 4 : i32
    %376 = vector.shape_cast %375 : vector<8x128xi32> to vector<1x8x128xi32>
    %c0_70 = arith.constant 0 : index
    %c0_71 = arith.constant 0 : index
    %c0_72 = arith.constant 0 : index
    %377 = vector.load %arg5[%c0_70, %c0_71, %c0_72] : memref<1x8x128xi32, #tpu.memory_space<vmem>>, vector<1x8x128xi32>
    tpu.vector_store %arg5[%c0_70, %c0_71, %c0_72], %376 {strides = array<i32>} : memref<1x8x128xi32, #tpu.memory_space<vmem>>, vector<1x8x128xi32>,
    return
  }
  func.func @transform_0(%arg0: i32, %arg1: i32) -> (i32, i32, i32) {
    %c0_i32 = arith.constant 0 : i32
    %c0_i32_0 = arith.constant 0 : i32
    %c0_i32_1 = arith.constant 0 : i32
    return %arg0, %c0_i32, %c0_i32_0 : i32, i32, i32
  }
  func.func @transform_1(%arg0: i32, %arg1: i32) -> (i32, i32, i32) {
    %c0_i32 = arith.constant 0 : i32
    %c0_i32_0 = arith.constant 0 : i32
    %c0_i32_1 = arith.constant 0 : i32
    return %arg0, %c0_i32, %c0_i32_0 : i32, i32, i32
  }
  func.func @transform_2(%arg0: i32, %arg1: i32) -> (i32, i32, i32) {
    %c0_i32 = arith.constant 0 : i32
    %c0_i32_0 = arith.constant 0 : i32
    return %arg0, %arg1, %c0_i32 : i32, i32, i32
  }
  func.func @transform_3(%arg0: i32, %arg1: i32) -> (i32, i32, i32) {
    %c0_i32 = arith.constant 0 : i32
    %c0_i32_0 = arith.constant 0 : i32
    return %arg0, %arg1, %c0_i32 : i32, i32, i32
  }
}

</mosaic_0001>

<bundles_post_ra>
// kernel: tpu_custom_call.1
= control target key start
LH: loop header
LB: loop body
LE: loop exit
PB: predicated region body
PF: predicated region fallthrough
CT: control target
= control target key end

     0   :  { %s2265_s0 = inlined_call_operand.hbm [shape: f32[2,8,128], index: 0, kind: input, shape index: {}]   ;;  %s2266_s1 = inlined_call_operand.hbm [shape: f32[2,128,128], index: 1, kind: input, shape index: {}]   ;;  %s2267_s2 = inlined_call_operand.hbm [shape: f32[2,8,128], index: 2, kind: input, shape index: {}]   ;;  %s2268_s3 = inlined_call_operand.hbm [shape: s32[2,8,128], index: 3, kind: output, shape index: {}]  }
   0x1   :  { %2275 = sst [smem:[#allocation16_spill]] %s2266_s1 }
   0x2   :  { %8 = vsyncpa [#allocation4], 0 }
   0x3   :  { %10 = vsyncpa [#allocation4 + $0x1], 0 }
   0x4   :  { %11 = vsyncpa [#allocation7], 0 }
   0x5   :  { %13 = vsyncpa [#allocation7 + $0x1], 0 }
   0x6   :  { %14 = vsyncpa [#allocation5], 0 }
   0x7   :  { %16 = vsyncpa [#allocation5 + $0x1], 0  ;;  %s1794_s12 = smov 0   ;;  %s1796_s13 = smov 0  }
   0x8   :  { %s1798_s14 = smov 0   ;;  %s1800_s15 = smov 0  }
   0x9   :  { %s1802_s16 = smov 0   ;;  %s1804_s17 = smov 0  }
   0xa LB: > { %2276 = sst [smem:[#allocation13_spill]] %s1751_s16  ;;  %s1825_s18 = sadd.s32 4294967295, %s1755_s17   ;;  %s1755_s17 = sphi %s1804_s17, %s22_s17   ;;  %s1751_s16 = sphi %s1802_s16, %s2298_s16   ;;  %s1747_s15 = sphi %s1800_s15, %s2297_s15   ;;  %s1743_s14 = sphi %s1798_s14, %s2301_s14   ;;  %s1739_s13 = sphi %s1796_s13, %s2300_s13   ;;  %s1735_s12 = sphi %s1794_s12, %s2299_s12  }
   0xb   : > { %s1147_s19 = sadd.s32 4294967294, %s1755_s17   ;;  %s34_s20 = sadd.s32 1, %s1751_s16 }
   0xc   : > { %s41_s21 = sadd.s32 1, %s1743_s14  ;;  %p36_p0 = scmp.ge.s32.totalorder %s34_s20, 2 }
   0xd   : > { %p48_p1 = scmp.ne.s32.totalorder %s1743_s14, %s1739_s13  ;;  %p49_p2 = scmp.eq.s32.totalorder %s1755_s17, 0 }
   0xe   : > { %p54_p3 = scmp.ne.s32.totalorder %s1739_s13, %s1735_s12  ;;  %s2303_s20 = smov (%p36_p0, %s34_s20), 0 }
   0xf   : > { %2277 = sst [smem:[#allocation14_spill]] %s2303_s20  ;;  %p1837_p4 = por %p49_p2, %p48_p1 }
  0x10   : > { %p55_p5 = scmp.eq.s32.totalorder %s1825_s18, 0  ;;  %s38_s23 = ssub.s32 %s1751_s16, %s2303_s20 }
  0x11   : > { %p134_p6 = scmp.eq.s32.totalorder %s1825_s18, 1  ;;  %p39_p7 = scmp.eq.s32.totalorder %s38_s23, 0 }
  0x12   : > { %p1845_p8 = por %p55_p5, %p54_p3  ;;  %p140_p10 = scmp.eq.s32.totalorder %s1147_s19, 1 }
  0x13   : > { %p1849_p9 = por %p134_p6, %p48_p1  ;;  %p1501_p13 = scmp.lt.s32.totalorder %s1755_s17, 2 }
  0x14   : > { %s2279_s24 = scalar_select %p1845_p8, 1, 0 }
  0x15   : > { %s2280_s25 = scalar_select %p1849_p9, 1, 0 }
  0x16   : > { %s1854_s26 = scalar_select %p39_p7, %s1743_s14, %s41_s21  }
  0x17   : > { %p1856_p11 = por %p140_p10, %p54_p3  ;;  %s1863_s28 = sand.u32 1, %s1743_s14  }
  0x18   : > { %2281 = sst [smem:[#allocation15_spill]] %s1854_s26  ;;  %s178_s29 = sand.u32 1, %s1755_s17  }
  0x19   : > { %s2282_s27 = scalar_select %p1856_p11, 1, 0 }
  0x1a   : > { %s1152_s30 = sshll.u32 %s1863_s28, 7  ;;  %p1869_p0 = pnand %p1501_p13, %p1837_p4 }
  0x1b   : > { %s1174_s5 = sshll.u32 %s1751_s16, 11  ;;  %s2284_s1 = sld [smem:[#allocation16_spill]] }
  0x1c   : > { %s2283_s4 = scalar_select %p1869_p0, 1, 0 }
  0x1d   : > { %s182_s9 = scalar_lea.vmem [#allocation6], %s1152_s30  ;;  %s1881_s11 = scalar_lea.sflag [#allocation7], %s178_s29 }
  0x1e   : > { %s189_s10 = sshll.u32 %s182_s9, 4  ;;  %p1887_p2 = pneg %p1869_p0  ;;  %s1879_s10 = int_to_ptr.vmem [resolvable:$true] %s189_s10 }
  0x21   : > { %s1877_s8 = scalar_lea.hbm %s2284_s1, %s1174_s5  ;;  %s1584_s30 = scalar_lea.hbm %s2284_s1, 4096 }
  0x22   : > { %s1579_s19 = scalar_lea.hbm %s1877_s8, 2048  ;;  %p1585_p5 = scmp.lt.u32.totalorder %s1877_s8, %s2284_s1 }
  0x23   : > { %p1580_p1 = scmp.ne.s32.totalorder %s1877_s8, %s1579_s19  ;;  %p1586_p6 = scmp.lt.u32.totalorder %s1584_s30, %s1579_s19 }
  0x24   : > { %p1588_p10 = scmp.lt.u32.totalorder %s1579_s19, %s1877_s8 }
  0x25   : > { %p1582_p3 = pnand %p1887_p2, %p1580_p1  ;;  %p1587_p7 = por %p1586_p6, %p1585_p5 }
  0x27   : > { %p1583_p4 = pneg %p1582_p3  ;;  %p1589_p13 = por %p1588_p10, %p1587_p7 }
  0x29   : > { %p1590_p12 = pnand %p1589_p13, %p1583_p4 }
  0x2b   : > { %1593 = shalt.err (!%p1590_p12)
}
  0x2c   : > { %s1594_s29 = scalar_lea.vmem %s1879_s10, 2048  ;;  %s1757_s7 = smov [#allocation6]  }
  0x2d   : > { %p1595_p1 = scmp.ne.s32.totalorder %s1879_s10, %s1594_s29  ;;  %s1599_s9 = sshll.u32 %s1757_s7, 4  ;;  %s1600_s9 = int_to_ptr.vmem [resolvable:$false] %s1599_s9 }
  0x2e   : > { %s1601_s22 = scalar_lea.vmem %s1600_s9, 4096  ;;  %p1602_p9 = scmp.lt.s32.totalorder %s1879_s10, %s1600_s9 }
  0x2f   : > { %p1597_p3 = pnand %p1595_p1, %p1887_p2  ;;  %p1603_p8 = scmp.lt.s32.totalorder %s1601_s22, %s1594_s29 }
  0x31   : > { %p1598_p11 = pneg %p1597_p3  ;;  %p1604_p5 = por %p1603_p8, %p1602_p9 }
  0x33   : > { %p1605_p6 = pnand %p1604_p5, %p1598_p11 }
  0x35   : > { %1608 = shalt.err (!%p1605_p6)
}
  0x36   : > { %s1758_s19 = smov 128   ;;  %s1759_s23 = smov 8  }
  0x37   : > { %1493 = dma.hbm_to_vmem [thread:$0]  (!%p1869_p0), %s1877_s8, 2048, %s1879_s10, %s1881_s11, %s1758_s19, %s1758_s19, %s1759_s23  }
  0x38   : > { %p1157_p12 = scmp.ge.s32.totalorder %s1755_s17, 1  ;;  %p216_p4 = scmp.lt.s32.totalorder %s1755_s17, 3 }
  0x39   : > { %s2273_s5 = sshll.u32 %s1863_s28, 3  ;;  %s1151_s6 = sshll.u32 %s1751_s16, 7 }
  0x3a   : > { %p1913_p8 = pnand %p1157_p12, %p216_p4  ;;  %s1922_s9 = scalar_lea.hbm %s2265_s0, %s1151_s6 }
  0x3b   : > { %s164_s22 = scalar_lea.vmem [#allocation3], %s2273_s5  ;;  %s1931_s23 = scalar_lea.hbm %s2267_s2, %s1151_s6 }
  0x3c   : > { %s2286_s30 = scalar_select %p1913_p8, 1, 0 }
  0x3d   : > { %s171_s8 = sshll.u32 %s164_s22, 4  ;;  %s161_s1 = scalar_lea.sflag [#allocation4], %s1863_s28  ;;  %s1926_s8 = int_to_ptr.vmem [resolvable:$true] %s171_s8 }
  0x3e   : > { %s1609_s20 = scalar_lea.hbm %s1922_s9, 128  ;;  %s1614_s16 = scalar_lea.hbm %s2265_s0, 256 }
  0x3f   : > { %p1610_p9 = scmp.ne.s32.totalorder %s1922_s9, %s1609_s20  ;;  %p1615_p10 = scmp.lt.u32.totalorder %s1922_s9, %s2265_s0 }
  0x40   : > { %p1616_p13 = scmp.lt.u32.totalorder %s1614_s16, %s1609_s20  ;;  %p1618_p3 = scmp.lt.u32.totalorder %s1609_s20, %s1922_s9 }
  0x41   : > { %p1612_p11 = pnand %p1610_p9, %p1887_p2 }
  0x42   : > { %p1617_p1 = por %p1616_p13, %p1615_p10 }
  0x43   : > { %p1613_p7 = pneg %p1612_p11 }
  0x44   : > { %p1619_p5 = por %p1618_p3, %p1617_p1 }
  0x46   : > { %p1620_p6 = pnand %p1619_p5, %p1613_p7 }
  0x48   : > { %1623 = shalt.err (!%p1620_p6)
}
  0x49   : > { %s1624_s6 = scalar_lea.vmem %s1926_s8, 128  ;;  %s1760_s22 = smov [#allocation3]  }
  0x4a   : > { %p1625_p12 = scmp.ne.s32.totalorder %s1926_s8, %s1624_s6  ;;  %s1629_s10 = sshll.u32 %s1760_s22, 4  ;;  %s1630_s10 = int_to_ptr.vmem [resolvable:$false] %s1629_s10 }
  0x4b   : > { %s1631_s26 = scalar_lea.vmem %s1630_s10, 256  ;;  %p1632_p11 = scmp.lt.s32.totalorder %s1926_s8, %s1630_s10 }
  0x4c   : > { %p1627_p4 = pnand %p1625_p12, %p1887_p2  ;;  %p1633_p8 = scmp.lt.s32.totalorder %s1631_s26, %s1624_s6 }
  0x4e   : > { %p1628_p9 = pneg %p1627_p4  ;;  %p1634_p10 = por %p1633_p8, %p1632_p11 }
  0x50   : > { %p1635_p13 = pnand %p1634_p10, %p1628_p9 }
  0x52   : > { %1638 = shalt.err (!%p1635_p13)
}
  0x53   : > { %1490 = dma.hbm_to_vmem [thread:$0]  (!%p1869_p0), %s1922_s9, 128, %s1926_s8, %s161_s1  }
  0x54   : > { %s2287_s16 = sshll.u32 %s1863_s28, 3  ;;  %s1639_s19 = scalar_lea.hbm %s1931_s23, 128 }
  0x55   : > { %s203_s20 = scalar_lea.vmem [#allocation8], %s2287_s16  ;;  %p1640_p7 = scmp.ne.s32.totalorder %s1931_s23, %s1639_s19 }
  0x56   : > { %s211_s5 = sshll.u32 %s203_s20, 4  ;;  %s1644_s6 = scalar_lea.hbm %s2267_s2, 256  ;;  %s212_s5 = int_to_ptr.vmem [resolvable:$true] %s211_s5 }
  0x57   : > { %p1642_p8 = pnand %p1640_p7, %p1887_p2  ;;  %p1645_p3 = scmp.lt.u32.totalorder %s1931_s23, %s2267_s2 }
  0x58   : > { %p1646_p5 = scmp.lt.u32.totalorder %s1644_s6, %s1639_s19  ;;  %p1648_p12 = scmp.lt.u32.totalorder %s1639_s19, %s1931_s23 }
  0x59   : > { %p1643_p1 = pneg %p1642_p8 }
  0x5a   : > { %p1647_p6 = por %p1646_p5, %p1645_p3 }
  0x5c   : > { %p1649_p4 = por %p1648_p12, %p1647_p6 }
  0x5e   : > { %p1650_p9 = pnand %p1649_p4, %p1643_p1 }
  0x60   : > { %1653 = shalt.err (!%p1650_p9)
}
  0x61   : > { %s1654_s1 = scalar_lea.vmem %s212_s5, 128  ;;  %s1761_s28 = smov [#allocation8]  }
  0x62   : > { %p1655_p11 = scmp.ne.s32.totalorder %s212_s5, %s1654_s1  ;;  %s1659_s9 = sshll.u32 %s1761_s28, 4  ;;  %s1660_s9 = int_to_ptr.vmem [resolvable:$false] %s1659_s9 }
  0x63   : > { %s1661_s8 = scalar_lea.vmem %s1660_s9, 256  ;;  %p1662_p7 = scmp.lt.s32.totalorder %s212_s5, %s1660_s9 }
  0x64   : > { %p1657_p10 = pnand %p1655_p11, %p1887_p2  ;;  %p1663_p8 = scmp.lt.s32.totalorder %s1661_s8, %s1654_s1 }
  0x66   : > { %p1658_p13 = pneg %p1657_p10  ;;  %p1664_p0 = por %p1663_p8, %p1662_p7 }
  0x68   : > { %p1665_p3 = pnand %p1664_p0, %p1658_p13 }
  0x6a   : > { %1668 = shalt.err (!%p1665_p3)
}
  0x6b   : > { %p2288_p5 = scmp.ne.s32.totalorder %s2283_s4, 0  ;;  %p2289_p1 = scmp.ne.s32.totalorder %s2286_s30, 0 }
  0x6c   : > { %s1978_s21 = sand.u32 (!%p2289_p1), 1, %s1739_s13   ;;  %p2290_p0 = scmp.ne.s32.totalorder (!%p2289_p1), %s2279_s24, 0 }
  0x6d   : > { %1496 = dma.hbm_to_vmem [thread:$0]  (!%p2288_p5), %s1931_s23, 128, %s212_s5, %s1881_s11  }
  0x6e   : > { %220 = sbr.rel (%p2289_p1) target bundleno = 3546 (0xdda), region = 32  ;;  %s1981_s26 = sshll.u32 (!%p2289_p1), %s1978_s21, 3 }
  0x6f   : > { %s223_s16 = scalar_lea.sflag (!%p2289_p1), [#allocation4], %s1978_s21  ;;  %s226_s20 = scalar_lea.vmem (!%p2289_p1), [#allocation3], %s1981_s26 }
  0x75   : > { %1722 = dma.done.wait (%p2290_p0), %s223_s16, 128  }
  0x76   : > { %1724 = vsyncadd (%p2290_p0), %s223_s16, 4294967168  ;;  %s231_s4 = sand.u32 1, %s1825_s18   ;;  %s1159_s11 = sshll.u32 %s1978_s21, 7 }
  0x77   : > { %s232_s30 = scalar_lea.sflag [#allocation7], %s231_s4  ;;  %s1991_s23 = scalar_lea.vmem [#allocation6], %s1159_s11 }
  0x78   : > { %1726 = dma.done.wait (%p2290_p0), %s232_s30, 2176  }
  0x79   : > { %1728 = vsyncadd (%p2290_p0), %s232_s30, 4294965120  ;;  %s244_s5 = scalar_lea.vmem [#allocation8], %s1981_s26  ;;  %v285_v2 = vlaneseq  ;;  %v306_v8 = vld [vmem:[%s1991_s23] sm:$0xff]  ;;  %v307_v9 = vld [vmem:[%s1991_s23 + $0x8] sm:$0xff]  ;;  %v1762_v11 = vmov 0.0|0.0   ;;  %vm1763_vm3 = vmmov 0  }
  0x7a   : > { %v277_v0 = vld [vmem:[%s244_s5] sm:$0xff]  ;;  %v308_v10 = vld [vmem:[%s1991_s23 + $0x10] sm:$0xff]  ;;  %1383 = vmatprep.subr.bf16.mxu0 %v1762_v11  ;;  %v2013_v12 = vpack.c.bf16 %v307_v9, %v306_v8  ;;  %v309_v13 = vld [vmem:[%s1991_s23 + $0x18] sm:$0xff]  ;;  %1407 = vmatprep.subr.bf16.mxu1 %v1762_v11  ;;  %v1764_v37 = vmov 0.0   ;;  %v1765_v43 = vmov 1.0   ;;  %v1766_v44 = vmov 1  }
  0x7b   : > { %vm278_vm0 = vcmp.gt.f32.partialorder %v277_v0, 0.25  ;;  %v2002_v3 = vand.u32 127, %v285_v2  ;;  %v2018_v14 = vpack.c.bf16 %v309_v13, %v308_v10  ;;  %v310_v15 = vld [vmem:[%s1991_s23 + $0x20] sm:$0xff]  ;;  %v311_v16 = vld [vmem:[%s1991_s23 + $0x28] sm:$0xff]  ;;  %v312_v18 = vld [vmem:[%s1991_s23 + $0x30] sm:$0xff]  ;;  %1275 = vmatprep.mubr.msk.f32.mxu0 %vm1763_vm3, %v1764_v37  ;;  %1310 = vmatprep.mubr.msk.f32.mxu1 %vm1763_vm3, %v1764_v37  ;;  %v1767_v45 = vmov 2  }
  0x7c   : > { %v1998_v1 = vsel %vm278_vm0, %v277_v0, -inf  ;;  %1385 = vmatpush3.bf16.msra.mxu0 %v2013_v12  ;;  %1409 = vmatpush3.bf16.msra.mxu1 %v2013_v12  ;;  %v2026_v17 = vpack.c.bf16 %v311_v16, %v310_v15  ;;  %v313_v19 = vld [vmem:[%s1991_s23 + $0x38] sm:$0xff]  ;;  %v314_v21 = vld [vmem:[%s1991_s23 + $0x40] sm:$0xff]  ;;  %v315_v22 = vld [vmem:[%s1991_s23 + $0x48] sm:$0xff]  ;;  %s1768_s18 = smov 112   ;;  %s1769_s24 = smov 120  }
  0x7d   : > { %282 = vmax.xlane.f32.xlu0 %v1998_v1  ;;  %1386 = vmatprep.subr.bf16.mxu0 %v1762_v11  ;;  %v2034_v20 = vpack.c.bf16 %v313_v19, %v312_v18  ;;  %v2042_v23 = vpack.c.bf16 %v315_v22, %v314_v21  ;;  %v316_v24 = vld [vmem:[%s1991_s23 + $0x50] sm:$0xff]  ;;  %v317_v25 = vld [vmem:[%s1991_s23 + $0x58] sm:$0xff]  ;;  %v318_v27 = vld [vmem:[%s1991_s23 + $0x60] sm:$0xff]  ;;  %v1770_v52 = vmov 0   ;;  %v1771_v53 = vmov 3   ;;  %s276_s19 = scalar_lea.vmem [#allocation9], %s1981_s26 }
  0x7e   : > { %1410 = vmatprep.subr.bf16.mxu1 %v1762_v11  ;;  %v2050_v26 = vpack.c.bf16 %v317_v25, %v316_v24  ;;  %v319_v28 = vld [vmem:[%s1991_s23 + $0x68] sm:$0xff]  ;;  %v320_v34 = vld [vmem:[%s1991_s23 + $0x70] sm:$0xff]  ;;  %v321_v35 = vld [vmem:[%s1991_s23 + $0x78] sm:$0xff]  ;;  %1567 = vset.pattern.permute.xlu0 %v1766_v44  ;;  %v1772_v54 = vmov 4   ;;  %v403_v55 = vshrl.u32 %v285_v2, 7  ;;  %vm459_vm9 = vcmp.eq.s32.totalorder %v2002_v3, 0 }
  0x7f   : > { %v2058_v29 = vpack.c.bf16 %v319_v28, %v318_v27  ;;  %v2069_v36 = vpack.c.bf16 %v321_v35, %v320_v34  ;;  %1564 = vset.pattern.permute.xlu1 %v1767_v45  ;;  %v401_v59 = vld [vmem:[%s226_s20] sm:$0xff]  ;;  %vm640_vm11 = vcmp.eq.s32.totalorder %v2002_v3, 1  ;;  %s1171_s29 = sshll.u32 %s1747_s15, 7  ;;  %s1023_s7 = sshll.u32 %s276_s19, 4  ;;  %s1024_s7 = int_to_ptr.vmem [resolvable:$true] %s1023_s7 }
  0x80   : > { %1388 = vmatpush3.bf16.msra.mxu0 %v2018_v14  ;;  %1412 = vmatpush3.bf16.msra.mxu1 %v2018_v14  ;;  %v414_v56 = vsub.s32 0, %v403_v55  ;;  %v404_v58 = vsub.s32 2, %v403_v55  ;;  %v434_v60 = vsub.s32 1, %v403_v55  ;;  %v425_v62 = vsub.s32 3, %v403_v55  ;;  %s2222_s10 = scalar_lea.hbm %s2268_s3, %s1171_s29  ;;  %s1009_s1 = scalar_lea.sflag [#allocation5], %s1978_s21 }
  0x81   : > { %1389 = vmatprep.subr.bf16.mxu0 %v1762_v11  ;;  %1413 = vmatprep.subr.bf16.mxu1 %v1762_v11  ;;  %v446_v2 = vsub.s32 4, %v403_v55  ;;  %s1669_s28 = scalar_lea.vmem %s1024_s7, 128  ;;  %p2293_p6 = scmp.ne.s32.totalorder %s2280_s25, 0 }
  0x82   : > { %v2116_v61 = vrot.slane %v401_v59, %v414_v56  ;;  %v2118_v63 = vrot.slane %v401_v59, %v404_v58  ;;  %p1670_p2 = scmp.ne.s32.totalorder %s1024_s7, %s1669_s28  ;;  %s1773_s9 = smov [#allocation9]  }
  0x83   : > { %v2128_v18 = vrot.slane %v401_v59, %v446_v2  ;;  %s1673_s8 = sshll.u32 %s1773_s9, 4  ;;  %s1674_s8 = int_to_ptr.vmem [resolvable:$false] %s1673_s8 }
  0x84   : > { %1391 = vmatpush3.bf16.msra.mxu0 %v2026_v17  ;;  %1415 = vmatpush3.bf16.msra.mxu1 %v2026_v17  ;;  %p1671_p12 = pnand %p1670_p2, %p2293_p6  ;;  %s1675_s16 = scalar_lea.vmem %s1674_s8, 256 }
  0x85   : > { %1392 = vmatprep.subr.bf16.mxu0 %v1762_v11  ;;  %1416 = vmatprep.subr.bf16.mxu1 %v1762_v11  ;;  %p1676_p9 = scmp.lt.s32.totalorder %s1024_s7, %s1674_s8  ;;  %p1677_p11 = scmp.lt.s32.totalorder %s1675_s16, %s1669_s28 }
  0x86   : > { %p1672_p4 = pneg %p1671_p12 }
  0x87   : > { %p1678_p10 = por %p1677_p11, %p1676_p9 }
  0x88   : > { %1394 = vmatpush3.bf16.msra.mxu0 %v2034_v20  ;;  %1418 = vmatpush3.bf16.msra.mxu1 %v2034_v20 }
  0x89   : > { %1395 = vmatprep.subr.bf16.mxu0 %v1762_v11  ;;  %1419 = vmatprep.subr.bf16.mxu1 %v1762_v11  ;;  %p1679_p13 = pnand %p1678_p10, %p1672_p4 }
  0x8c   : > { %1397 = vmatpush3.bf16.msra.mxu0 %v2042_v23  ;;  %1421 = vmatpush3.bf16.msra.mxu1 %v2042_v23 }
  0x8d   : > { %1398 = vmatprep.subr.bf16.mxu0 %v1762_v11  ;;  %1422 = vmatprep.subr.bf16.mxu1 %v1762_v11 }
  0x90   : > { %1400 = vmatpush3.bf16.msra.mxu0 %v2050_v26  ;;  %1424 = vmatpush3.bf16.msra.mxu1 %v2050_v26 }
  0x91   : > { %1401 = vmatprep.subr.bf16.mxu0 %v1762_v11  ;;  %1425 = vmatprep.subr.bf16.mxu1 %v1762_v11 }
  0x94   : > { %1403 = vmatpush3.bf16.msra.mxu0 %v2058_v29  ;;  %1427 = vmatpush3.bf16.msra.mxu1 %v2058_v29 }
  0x95   : > { %1404 = vmatprep.subr.bf16.mxu0 %v1762_v11  ;;  %1428 = vmatprep.subr.bf16.mxu1 %v1762_v11 }
  0x98   : > { %1406 = vmatpush3.bf16.msra.mxu0 %v2069_v36  ;;  %1430 = vmatpush3.bf16.msra.mxu1 %v2069_v36 }
  0x99   : > { %1431 = vmatprep.subr.bf16.mxu0 %v1762_v11  ;;  %1455 = vmatprep.subr.bf16.mxu1 %v1762_v11 }
 0x10a   : > { %v2004_v4 = vpop.xlane.xlu0 %282 }
 0x10b   : > { %vm287_vm1 = vcmp.eq.f32.partialorder %v1998_v1, %v2004_v4  ;;  %vm284_vm10 = vcmp.gt.f32.partialorder %v2004_v4, -inf }
 0x10c   : > { %v288_v5 = vsel %vm287_vm1, %v2002_v3, 128  ;;  %vm462_vm13 = vmand %vm459_vm9, %vm284_vm10 }
 0x10d   : > { %v290_v6 = vshra.s32 %v288_v5, 16  ;;  %v289_v30 = vand.u32 65535, %v288_v5  ;;  %v2120_v5 = vrot.slane %v401_v59, %v434_v60 }
 0x10f   : > { %v292_v7 = vcvt.s32.f32 %v290_v6  ;;  %v291_v32 = vcvt.s32.f32 %v289_v30 }
 0x111   : > { %293 = vmin.xlane.f32.xlu0 %v292_v7 }
 0x19e   : > { %v294_v31 = vpop.xlane.xlu0 %293 }
 0x19f   : > { %vm295_vm2 = vcmp.eq.f32.partialorder %v292_v7, %v294_v31  ;;  %v300_v38 = vcvt.f32.s32 %v294_v31  ;;  %v2123_v7 = vrot.slane %v401_v59, %v425_v62 }
 0x1a0   : > { %v296_v33 = vsel %vm295_vm2, %v291_v32, inf }
 0x1a1   : > { %297 = vmin.xlane.f32.xlu1 %v296_v33  ;;  %v301_v40 = vshll.u32 %v300_v38, 16 }
 0x22e   : > { %v298_v39 = vpop.xlane.xlu1 %297 }
 0x22f   : > { %v299_v41 = vcvt.f32.s32 %v298_v39 }
 0x231   : > { %v2079_v42 = vadd.s32 %v301_v40, %v299_v41 }
 0x233   : > { %vm303_vm4 = vcmp.eq.s32.totalorder %v2002_v3, %v2079_v42 }
 0x234   : > { %1276 = vmatmul.mubr.msk.f32.vlgmr.msra.gmra.mrb[0].mxu0 %vm303_vm4, %v1765_v43 }
 0x235   : > { %1433 = vmatpush3.bf16.msra.mxu0 %v2013_v12  ;;  %1345 = vmatprep.mubr.msk.f32.mxu0 %vm1763_vm3, %v1764_v37 }
 0x236   : > { %1434 = vmatprep.subr.bf16.mxu0 %v1762_v11 }
 0x239   : > { %1436 = vmatpush3.bf16.msra.mxu0 %v2018_v14 }
 0x23a   : > { %1437 = vmatprep.subr.bf16.mxu0 %v1762_v11 }
 0x23d   : > { %1439 = vmatpush3.bf16.msra.mxu0 %v2026_v17 }
 0x23e   : > { %1440 = vmatprep.subr.bf16.mxu0 %v1762_v11 }
 0x241   : > { %1442 = vmatpush3.bf16.msra.mxu0 %v2034_v20 }
 0x242   : > { %1443 = vmatprep.subr.bf16.mxu0 %v1762_v11 }
 0x245   : > { %1445 = vmatpush3.bf16.msra.mxu0 %v2042_v23 }
 0x246   : > { %1446 = vmatprep.subr.bf16.mxu0 %v1762_v11 }
 0x249   : > { %1448 = vmatpush3.bf16.msra.mxu0 %v2050_v26 }
 0x24a   : > { %1449 = vmatprep.subr.bf16.mxu0 %v1762_v11 }
 0x24d   : > { %1451 = vmatpush3.bf16.msra.mxu0 %v2058_v29 }
 0x24e   : > { %1452 = vmatprep.subr.bf16.mxu0 %v1762_v11 }
 0x251   : > { %1454 = vmatpush3.bf16.msra.mxu0 %v2069_v36 }
 0x307   : > { %v388_v46 = vpop.f32.mrb[0].mxu0 }
 0x308   : > { %397 = vrot.lane.b32.xlu0 %v388_v46, %s1768_s18  ;;  %393 = vrot.lane.b32.xlu1 %v388_v46, %s1769_s24  ;;  %v1277_v47 = vpop.f32.mrb[1].mxu0 }
 0x37a   : > { %v394_v48 = vpop.permute.xlu1 %393  ;;  %v398_v50 = vpop.permute.xlu0 %397 }
 0x37b   : > { %v396_v49 = vadd.f32 %v394_v48, %v388_v46 }
 0x37d   : > { %v400_v51 = vadd.f32 %v398_v50, %v396_v49  ;;  %v463_v50 = vsel %vm462_vm13, %v2079_v42, 4294967295 }
 0x37f   : > { %437 = vperm.xlu0 %1567, %v400_v51   ;;  %408 = vperm.xlu1 %1564, %v400_v51  }
 0x383   : > { %1565 = vset.pattern.permute.xlu1 %v1770_v52  ;;  %1571 = vset.pattern.permute.xlu0 %v1771_v53 }
 0x384   : > { %417 = vperm.xlu1 %1565, %v400_v51  }
 0x388   : > { %1566 = vset.pattern.permute.xlu1 %v1771_v53 }
 0x389   : > { %428 = vperm.xlu1 %1566, %v400_v51  }
 0x38d   : > { %1568 = vset.pattern.permute.xlu1 %v1772_v54 }
 0x38e   : > { %449 = vperm.xlu1 %1568, %v400_v51  }
 0x392   : > { %1569 = vset.pattern.permute.xlu1 %v1767_v45 }
 0x3fe   : > { %v409_v57 = vpop.permute.xlu1 %408  ;;  %v438_v8 = vpop.permute.xlu0 %437 }
 0x3ff   : > { %v411_v9 = vmin.f32 %v2118_v63, %v409_v57  ;;  %v440_v13 = vmax.f32 %v2120_v5, %v438_v8 }
 0x403   : > { %v418_v0 = vpop.permute.xlu1 %417 }
 0x404   : > { %v420_v6 = vmax.f32 %v2116_v61, %v418_v0 }
 0x406   : > { %v421_v15 = vsub.f32 %v411_v9, %v420_v6 }
 0x408   : > { %v429_v10 = vpop.permute.xlu1 %428  ;;  %v422_v21 = vmax.f32 %v421_v15, 0.0 }
 0x409   : > { %v431_v16 = vmin.f32 %v2123_v7, %v429_v10 }
 0x40b   : > { %v441_v19 = vsub.f32 %v431_v16, %v440_v13 }
 0x40d   : > { %v442_v22 = vmax.f32 %v441_v19, 0.0  ;;  %v450_v24 = vpop.permute.xlu1 %449 }
 0x40e   : > { %v452_v25 = vadd.f32 %v450_v24, %v2128_v18 }
 0x40f   : > { %v443_v27 = vmul.f32 %v442_v22, %v422_v21 }
 0x411   : > { %v453_v28 = vsub.f32 %v452_v25, %v443_v27 }
 0x413   : > { %v454_v30 = vmul.f32 0.5, %v453_v28 }
 0x415   : > { %vm455_vm5 = vcmp.gt.f32.partialorder %v443_v27, %v454_v30 }
 0x416   : > { %vm456_vm6 = vmor %vm455_vm5, %vm303_vm4  ;;  %vm821_vm4 = vcmp.eq.s32.totalorder %v2002_v3, 2 }
 0x417   : > { %v2135_v31 = vsel %vm456_vm6, -inf, %v1998_v1 }
 0x418   : > { %465 = vmax.xlane.f32.xlu1 %v2135_v31 }
 0x4a5   : > { %v466_v32 = vpop.xlane.xlu1 %465 }
 0x4a6   : > { %vm468_vm7 = vcmp.eq.f32.partialorder %v2135_v31, %v466_v32  ;;  %vm467_vm12 = vcmp.gt.f32.partialorder %v466_v32, -inf }
 0x4a7   : > { %v469_v33 = vsel %vm468_vm7, %v2002_v3, 128  ;;  %vm643_vm14 = vmand %vm640_vm11, %vm467_vm12  ;;  %vm1002_vm12 = vcmp.eq.s32.totalorder %v2002_v3, 3 }
 0x4a8   : > { %v471_v34 = vshra.s32 %v469_v33, 16  ;;  %v470_v38 = vand.u32 65535, %v469_v33 }
 0x4aa   : > { %v473_v35 = vcvt.s32.f32 %v471_v34  ;;  %v472_v40 = vcvt.s32.f32 %v470_v38 }
 0x4ac   : > { %474 = vmin.xlane.f32.xlu0 %v473_v35 }
 0x539   : > { %v475_v39 = vpop.xlane.xlu0 %474 }
 0x53a   : > { %vm476_vm8 = vcmp.eq.f32.partialorder %v473_v35, %v475_v39  ;;  %v481_v46 = vcvt.f32.s32 %v475_v39 }
 0x53b   : > { %v477_v41 = vsel %vm476_vm8, %v472_v40, inf }
 0x53c   : > { %478 = vmin.xlane.f32.xlu0 %v477_v41  ;;  %v482_v47 = vshll.u32 %v481_v46, 16 }
 0x5c9   : > { %v479_v1 = vpop.xlane.xlu0 %478 }
 0x5ca   : > { %v480_v48 = vcvt.f32.s32 %v479_v1 }
 0x5cc   : > { %v483_v49 = vadd.s32 %v482_v47, %v480_v48 }
 0x5ce   : > { %v2144_v51 = vsel %vm643_vm14, %v483_v49, %v463_v50  ;;  %vm484_vm15 = vcmp.eq.s32.totalorder %v2002_v3, %v483_v49 }
 0x5cf   : > { %1311 = vmatmul.mubr.msk.f32.vlgmr.msra.gmra.mrb[0].mxu1 %vm484_vm15, %v1765_v43 }
 0x5d0   : > { %1457 = vmatpush3.bf16.msra.mxu1 %v2013_v12  ;;  %1380 = vmatprep.mubr.msk.f32.mxu1 %vm1763_vm3, %v1764_v37 }
 0x5d1   : > { %1458 = vmatprep.subr.bf16.mxu1 %v1762_v11 }
 0x5d4   : > { %1460 = vmatpush3.bf16.msra.mxu1 %v2018_v14 }
 0x5d5   : > { %1461 = vmatprep.subr.bf16.mxu1 %v1762_v11 }
 0x5d8   : > { %1463 = vmatpush3.bf16.msra.mxu1 %v2026_v17 }
 0x5d9   : > { %1464 = vmatprep.subr.bf16.mxu1 %v1762_v11 }
 0x5dc   : > { %1466 = vmatpush3.bf16.msra.mxu1 %v2034_v20 }
 0x5dd   : > { %1467 = vmatprep.subr.bf16.mxu1 %v1762_v11 }
 0x5e0   : > { %1469 = vmatpush3.bf16.msra.mxu1 %v2042_v23 }
 0x5e1   : > { %1470 = vmatprep.subr.bf16.mxu1 %v1762_v11 }
 0x5e4   : > { %1472 = vmatpush3.bf16.msra.mxu1 %v2050_v26 }
 0x5e5   : > { %1473 = vmatprep.subr.bf16.mxu1 %v1762_v11 }
 0x5e8   : > { %1475 = vmatpush3.bf16.msra.mxu1 %v2058_v29 }
 0x5e9   : > { %1476 = vmatprep.subr.bf16.mxu1 %v1762_v11 }
 0x5ec   : > { %1478 = vmatpush3.bf16.msra.mxu1 %v2069_v36 }
 0x6a2   : > { %v569_v4 = vpop.f32.mrb[0].mxu1 }
 0x6a3   : > { %578 = vrot.lane.b32.xlu1 %v569_v4, %s1768_s18  ;;  %574 = vrot.lane.b32.xlu0 %v569_v4, %s1769_s24  ;;  %v1312_v12 = vpop.f32.mrb[1].mxu1 }
 0x715   : > { %v575_v14 = vpop.permute.xlu0 %574  ;;  %v579_v20 = vpop.permute.xlu1 %578 }
 0x716   : > { %v577_v17 = vadd.f32 %v575_v14, %v569_v4 }
 0x718   : > { %v581_v23 = vadd.f32 %v579_v20, %v577_v17 }
 0x71a   : > { %609 = vperm.xlu0 %1571, %v581_v23   ;;  %589 = vperm.xlu1 %1569, %v581_v23  }
 0x71e   : > { %1570 = vset.pattern.permute.xlu1 %v1770_v52  ;;  %1575 = vset.pattern.permute.xlu0 %v1770_v52 }
 0x71f   : > { %598 = vperm.xlu1 %1570, %v581_v23  }
 0x723   : > { %1572 = vset.pattern.permute.xlu1 %v1766_v44 }
 0x724   : > { %618 = vperm.xlu1 %1572, %v581_v23  }
 0x728   : > { %1573 = vset.pattern.permute.xlu1 %v1772_v54 }
 0x729   : > { %630 = vperm.xlu1 %1573, %v581_v23  }
 0x72d   : > { %1574 = vset.pattern.permute.xlu1 %v1767_v45 }
 0x799   : > { %v590_v11 = vpop.permute.xlu1 %589  ;;  %v610_v36 = vpop.permute.xlu0 %609 }
 0x79a   : > { %v592_v37 = vmin.f32 %v2118_v63, %v590_v11  ;;  %v612_v55 = vmin.f32 %v2123_v7, %v610_v36 }
 0x79e   : > { %v599_v26 = vpop.permute.xlu1 %598 }
 0x79f   : > { %v601_v29 = vmax.f32 %v2116_v61, %v599_v26 }
 0x7a1   : > { %v602_v52 = vsub.f32 %v592_v37, %v601_v29 }
 0x7a3   : > { %v619_v42 = vpop.permute.xlu1 %618  ;;  %v603_v58 = vmax.f32 %v602_v52, 0.0 }
 0x7a4   : > { %v621_v56 = vmax.f32 %v2120_v5, %v619_v42 }
 0x7a6   : > { %v622_v57 = vsub.f32 %v612_v55, %v621_v56 }
 0x7a8   : > { %v623_v59 = vmax.f32 %v622_v57, 0.0  ;;  %v631_v60 = vpop.permute.xlu1 %630 }
 0x7a9   : > { %v633_v62 = vadd.f32 %v631_v60, %v2128_v18 }
 0x7aa   : > { %v624_v45 = vmul.f32 %v623_v59, %v603_v58 }
 0x7ac   : > { %v634_v0 = vsub.f32 %v633_v62, %v624_v45 }
 0x7ae   : > { %v635_v6 = vmul.f32 0.5, %v634_v0 }
 0x7b0   : > { %vm636_vm0 = vcmp.gt.f32.partialorder %v624_v45, %v635_v6 }
 0x7b1   : > { %vm637_vm1 = vmor %vm636_vm0, %vm484_vm15 }
 0x7b2   : > { %v638_v8 = vsel %vm637_vm1, -inf, %v2135_v31 }
 0x7b3   : > { %646 = vmax.xlane.f32.xlu0 %v638_v8 }
 0x840   : > { %v647_v2 = vpop.xlane.xlu0 %646 }
 0x841   : > { %vm649_vm2 = vcmp.eq.f32.partialorder %v638_v8, %v647_v2  ;;  %vm648_vm5 = vcmp.gt.f32.partialorder %v647_v2, -inf }
 0x842   : > { %v650_v9 = vsel %vm649_vm2, %v2002_v3, 128  ;;  %vm2186_vm6 = vmand %vm821_vm4, %vm648_vm5 }
 0x843   : > { %v652_v10 = vshra.s32 %v650_v9, 16  ;;  %v651_v15 = vand.u32 65535, %v650_v9 }
 0x845   : > { %v654_v13 = vcvt.s32.f32 %v652_v10  ;;  %v653_v19 = vcvt.s32.f32 %v651_v15 }
 0x847   : > { %655 = vmin.xlane.f32.xlu1 %v654_v13 }
 0x8d4   : > { %v656_v16 = vpop.xlane.xlu1 %655 }
 0x8d5   : > { %vm657_vm3 = vcmp.eq.f32.partialorder %v654_v13, %v656_v16  ;;  %v662_v22 = vcvt.f32.s32 %v656_v16 }
 0x8d6   : > { %v658_v21 = vsel %vm657_vm3, %v653_v19, inf }
 0x8d7   : > { %659 = vmin.xlane.f32.xlu0 %v658_v21  ;;  %v663_v25 = vshll.u32 %v662_v22, 16 }
 0x964   : > { %v660_v24 = vpop.xlane.xlu0 %659 }
 0x965   : > { %v661_v27 = vcvt.f32.s32 %v660_v24 }
 0x967   : > { %v2184_v28 = vadd.s32 %v663_v25, %v661_v27 }
 0x969   : > { %vm665_vm7 = vcmp.eq.s32.totalorder %v2002_v3, %v2184_v28  ;;  %v825_v31 = vsel %vm2186_vm6, %v2184_v28, %v2144_v51 }
 0x96a   : > { %1346 = vmatmul.mubr.msk.f32.vlgmr.msra.gmra.mrb[2].mxu0 %vm665_vm7, %v1765_v43 }
 0xa3d   : > { %v750_v32 = vpop.f32.mrb[2].mxu0 }
 0xa3e   : > { %759 = vrot.lane.b32.xlu1 %v750_v32, %s1768_s18  ;;  %755 = vrot.lane.b32.xlu0 %v750_v32, %s1769_s24  ;;  %v1347_v33 = vpop.f32.mrb[3].mxu0 }
 0xab0   : > { %v756_v34 = vpop.permute.xlu0 %755  ;;  %v760_v38 = vpop.permute.xlu1 %759 }
 0xab1   : > { %v758_v35 = vadd.f32 %v756_v34, %v750_v32 }
 0xab3   : > { %v762_v39 = vadd.f32 %v760_v38, %v758_v35 }
 0xab5   : > { %779 = vperm.xlu0 %1575, %v762_v39   ;;  %770 = vperm.xlu1 %1574, %v762_v39  }
 0xab9   : > { %1578 = vset.pattern.permute.xlu0 %v1772_v54  ;;  %1576 = vset.pattern.permute.xlu1 %v1771_v53 }
 0xaba   : > { %811 = vperm.xlu0 %1578, %v762_v39   ;;  %790 = vperm.xlu1 %1576, %v762_v39  }
 0xabe   : > { %1577 = vset.pattern.permute.xlu1 %v1766_v44 }
 0xabf   : > { %799 = vperm.xlu1 %1577, %v762_v39  }
 0xb34   : > { %v771_v40 = vpop.permute.xlu1 %770  ;;  %v780_v41 = vpop.permute.xlu0 %779 }
 0xb35   : > { %v782_v1 = vmax.f32 %v2116_v61, %v780_v41  ;;  %v773_v47 = vmin.f32 %v2118_v63, %v771_v40 }
 0xb37   : > { %v783_v49 = vsub.f32 %v773_v47, %v782_v1 }
 0xb39   : > { %v791_v46 = vpop.permute.xlu1 %790  ;;  %v812_v53 = vpop.permute.xlu0 %811  ;;  %v784_v4 = vmax.f32 %v783_v49, 0.0 }
 0xb3a   : > { %v793_v50 = vmin.f32 %v2123_v7, %v791_v46  ;;  %v814_v44 = vadd.f32 %v812_v53, %v2128_v18 }
 0xb3e   : > { %v800_v48 = vpop.permute.xlu1 %799 }
 0xb3f   : > { %v802_v54 = vmax.f32 %v2120_v5, %v800_v48 }
 0xb41   : > { %v803_v51 = vsub.f32 %v793_v50, %v802_v54 }
 0xb43   : > { %v804_v12 = vmax.f32 %v803_v51, 0.0 }
 0xb45   : > { %v805_v14 = vmul.f32 %v804_v12, %v784_v4 }
 0xb47   : > { %v815_v17 = vsub.f32 %v814_v44, %v805_v14 }
 0xb49   : > { %v816_v20 = vmul.f32 0.5, %v815_v17 }
 0xb4b   : > { %vm817_vm8 = vcmp.gt.f32.partialorder %v805_v14, %v816_v20 }
 0xb4c   : > { %vm818_vm9 = vmor %vm817_vm8, %vm665_vm7 }
 0xb4d   : > { %v819_v61 = vsel %vm818_vm9, -inf, %v638_v8 }
 0xb4e   : > { %827 = vmax.xlane.f32.xlu1 %v819_v61 }
 0xbdb   : > { %v828_v63 = vpop.xlane.xlu1 %827 }
 0xbdc   : > { %vm830_vm10 = vcmp.eq.f32.partialorder %v819_v61, %v828_v63  ;;  %vm829_vm13 = vcmp.gt.f32.partialorder %v828_v63, -inf }
 0xbdd   : > { %v831_v5 = vsel %vm830_vm10, %v2002_v3, 128  ;;  %vm1005_vm14 = vmand %vm1002_vm12, %vm829_vm13 }
 0xbde   : > { %v833_v7 = vshra.s32 %v831_v5, 16  ;;  %v832_v11 = vand.u32 65535, %v831_v5 }
 0xbe0   : > { %v835_v23 = vcvt.s32.f32 %v833_v7  ;;  %v834_v18 = vcvt.s32.f32 %v832_v11 }
 0xbe2   : > { %836 = vmin.xlane.f32.xlu0 %v835_v23 }
 0xc6f   : > { %v837_v26 = vpop.xlane.xlu0 %836 }
 0xc70   : > { %vm838_vm11 = vcmp.eq.f32.partialorder %v835_v23, %v837_v26  ;;  %v843_v36 = vcvt.f32.s32 %v837_v26 }
 0xc71   : > { %v839_v29 = vsel %vm838_vm11, %v834_v18, inf }
 0xc72   : > { %840 = vmin.xlane.f32.xlu0 %v839_v29  ;;  %v844_v42 = vshll.u32 %v843_v36, 16 }
 0xcff   : > { %v841_v37 = vpop.xlane.xlu0 %840 }
 0xd00   : > { %v842_v55 = vcvt.f32.s32 %v841_v37 }
 0xd02   : > { %v845_v52 = vadd.s32 %v844_v42, %v842_v55 }
 0xd04   : > { %vm846_vm15 = vcmp.eq.s32.totalorder %v2002_v3, %v845_v52  ;;  %v1006_v56 = vsel %vm1005_vm14, %v845_v52, %v825_v31 }
 0xd05   : > { %1381 = vmatmul.mubr.msk.f32.vlgmr.msra.gmra.mrb[2].mxu1 %vm846_vm15, %v1765_v43  ;;  %1007 = vst [vmem:[%s276_s19] sm:$0xff] %v1006_v56 }
 0xd06   : > { %1682 = shalt.err (!%p1679_p13)
}
 0xd07   : > { %s1683_s15 = scalar_lea.hbm %s2222_s10, 128  ;;  %s1687_s20 = scalar_lea.hbm %s2268_s3, 256 }
 0xd08   : > { %p1684_p7 = scmp.ne.s32.totalorder %s2222_s10, %s1683_s15  ;;  %p1688_p5 = scmp.lt.u32.totalorder %s2222_s10, %s2268_s3 }
 0xd09   : > { %p1689_p1 = scmp.lt.u32.totalorder %s1687_s20, %s1683_s15  ;;  %p1691_p2 = scmp.lt.u32.totalorder %s1683_s15, %s2222_s10 }
 0xd0a   : > { %p1685_p8 = pnand %p1684_p7, %p2293_p6 }
 0xd0b   : > { %p1690_p0 = por %p1689_p1, %p1688_p5 }
 0xd0c   : > { %p1686_p3 = pneg %p1685_p8 }
 0xd0d   : > { %p1692_p12 = por %p1691_p2, %p1690_p0 }
 0xd0f   : > { %p1693_p4 = pnand %p1692_p12, %p1686_p3 }
 0xd11   : > { %1696 = shalt.err (!%p1693_p4)
}
 0xd12   : > { %1485 = dma.vmem_to_hbm [thread:$0]  (%p2293_p6), %s1024_s7, 128, %s2222_s10, %s1009_s1  }
 0xdd8   : > { %v931_v3 = vpop.f32.mrb[2].mxu1 }
 0xdd9   : > { %v1382_v43 = vpop.f32.mrb[3].mxu1 }
 0xdda PF: > { %s1035_s30 = sand.u32 1, %s1735_s12   ;;  %p2294_p9 = scmp.ne.s32.totalorder %s2282_s27, 0 }
 0xddb   : > { %p2295_p11 = scmp.ge.s32.totalorder %s1755_s17, 2  ;;  %s1036_s23 = scalar_lea.sflag [#allocation5], %s1035_s30 }
 0xddd   : > { %p1498_p10 = pnand %p2295_p11, %p2294_p9 }
 0xddf   : > { %1730 = dma.done.wait (!%p1498_p10), %s1036_s23, 128  }
 0xde0   : > { %1732 = vsyncadd (!%p1498_p10), %s1036_s23, 4294967168  ;;  %s22_s17 = sadd.s32 1, %s1755_s17   ;;  %s2296_s25 = sld [smem:[#allocation15_spill]] }
 0xde1   : > { %p19_p13 = scmp.ge.s32.totalorder %s22_s17, 4   ;;  %s2297_s15 = sld [smem:[#allocation13_spill]] }
 0xde2   : > { %s2298_s16 = sld [smem:[#allocation14_spill]]  ;;  %s2299_s12 = smov %s1739_s13 }
 0xde3   : > { %s2300_s13 = smov %s1743_s14  ;;  %21 = sbr.rel (!%p19_p13) target bundleno = 10 (0xa), region = 101 }
 0xde6   : > { %s2301_s14 = smov %s2296_s25 }
 0xdea   :  { %1041 = vsyncpa [#allocation4], 1 }
 0xdeb   :  { %1043 = vsyncpa [#allocation4 + $0x1], 1 }
 0xdec   :  { %1044 = vsyncpa [#allocation7], 1 }
 0xded   :  { %1046 = vsyncpa [#allocation7 + $0x1], 1 }
 0xdee   :  { %1047 = vsyncpa [#allocation5], 1 }
 0xdef   :  { %1049 = vsyncpa [#allocation5 + $0x1], 1 }

</bundles_post_ra>
